<compile_context>
chip_gen: v7x
topology: tpu7x:2x2x1
jax: 0.10.0
libtpu: 0.0.40
codegen_flags: <defaults>
</compile_context>

<pallas_src>
import functools

import jax
import jax.numpy as jnp
from jax import lax
from jax.experimental import pallas as pl
from jax.experimental.pallas import tpu as pltpu

KSIZE = 21
PAD = 10
EPS = 1e-12            # F.normalize default eps
LANE = 128
TM = 256               # rows (of B*H*W) per grid step
TK_MAX = 1024          # max contraction chunk per grid step (multiple of 128)


def _round_up(x, m):
    return (x + m - 1) // m * m


def _pad2d(a, rows, cols):
    return jnp.pad(a, ((0, rows - a.shape[0]), (0, cols - a.shape[1])))


# ----------------------------- Pallas kernels ------------------------------

def _norm_silu(acc, b, gs):
    """bias -> L2-normalize over channels -> * (g*sqrt(C)) -> SiLU, all f32."""
    acc = acc + b                                           # (TM, Cp) + (1, Cp)
    ss = jnp.sum(acc * acc, axis=-1, keepdims=True)         # lane reduction
    inv = lax.rsqrt(jnp.maximum(ss, EPS * EPS))             # == 1/max(||x||, eps)
    y = acc * inv * gs
    return y * jax.nn.sigmoid(y)                            # SiLU


def _block_kernel(p_ref, w_ref, b_ref, gs_ref, o_ref, acc_ref):
    """Block: accumulate (patches @ W) over K tiles, finalize with RMSNorm+SiLU."""
    k = pl.program_id(1)

    @pl.when(k == 0)
    def _():
        acc_ref[...] = jnp.zeros_like(acc_ref)

    acc_ref[...] += jnp.dot(p_ref[...], w_ref[...],
                            preferred_element_type=jnp.float32)

    @pl.when(k == pl.num_programs(1) - 1)
    def _():
        o_ref[...] = _norm_silu(acc_ref[...], b_ref[...],
                                gs_ref[...]).astype(o_ref.dtype)


def _block_res_kernel(p_ref, w_ref, b_ref, gs_ref, x_ref, wr_ref, br_ref,
                      o_ref, acc_ref):
    """Block + fused residual: o = silu(rmsnorm(conv)) + (x @ Wr + br)."""
    k = pl.program_id(1)

    @pl.when(k == 0)
    def _():
        acc_ref[...] = jnp.zeros_like(acc_ref)

    acc_ref[...] += jnp.dot(p_ref[...], w_ref[...],
                            preferred_element_type=jnp.float32)

    @pl.when(k == pl.num_programs(1) - 1)
    def _():
        h = _norm_silu(acc_ref[...], b_ref[...], gs_ref[...])
        res = jnp.dot(x_ref[...], wr_ref[...],
                      preferred_element_type=jnp.float32) + br_ref[...]
        o_ref[...] = (h + res).astype(o_ref.dtype)


# ------------------------------ host wrappers -------------------------------

def _im2col_nhwc(x_nhwc, ksize, pad):
    """[B,H,W,C] -> [B*H*W, K*K*C], patch element order = (kh, kw, cin)."""
    B, H, W, C = x_nhwc.shape
    xp = jnp.pad(x_nhwc, ((0, 0), (pad, pad), (pad, pad), (0, 0)))
    cols = []
    for kh in range(ksize):
        for kw in range(ksize):
            cols.append(xp[:, kh:kh + H, kw:kw + W, :])
    patches = jnp.stack(cols, axis=3)                 # [B,H,W,K*K,C]
    return patches.reshape(B * H * W, ksize * ksize * C)


def _run_block(x_nhwc, w_hwio, b, g, residual=None):
    """One `Block`: conv(21x21, pad 10) -> RMSNorm -> SiLU.
    If residual=(x_res_nhwc, wr, br), fuses `+ conv1x1(x_res)` into the epilogue.
    Returns NHWC f32."""
    B, H, W, Cin = x_nhwc.shape
    Cout = w_hwio.shape[-1]
    M = B * H * W
    Kd = KSIZE * KSIZE * Cin

    # ---- tiling (M tiles parallel, Kd chunked into an accumulator) ----
    M_pad = _round_up(M, TM)
    Kd128 = _round_up(Kd, LANE)
    n_k = pl.cdiv(Kd128, TK_MAX)
    tk = _round_up(pl.cdiv(Kd128, n_k), LANE)
    Kd_pad = tk * n_k
    Cp = _round_up(Cout, LANE)                 # lane-dense output/bias/g

    # ---- operand prep: bf16 MXU operands, f32 epilogue params ----
    patches = _im2col_nhwc(x_nhwc, KSIZE, PAD)                       # [M, Kd] f32
    patches = _pad2d(patches, M_pad, Kd_pad).astype(jnp.bfloat16)
    w_mat = _pad2d(w_hwio.reshape(Kd, Cout), Kd_pad, Cp).astype(jnp.bfloat16)
    b2 = _pad2d(b.reshape(1, Cout).astype(jnp.float32), 1, Cp)
    gs2 = _pad2d((g * (float(Cout) ** 0.5)).reshape(1, Cout)
                 .astype(jnp.float32), 1, Cp)                         # g*scale folded

    grid = (M_pad // TM, n_k)
    p_spec = pl.BlockSpec((TM, tk), lambda i, k: (i, k))
    w_spec = pl.BlockSpec((tk, Cp), lambda i, k: (k, 0))
    v_spec = pl.BlockSpec((1, Cp), lambda i, k: (0, 0))
    o_spec = pl.BlockSpec((TM, Cp), lambda i, k: (i, 0))

    inputs = [patches, w_mat, b2, gs2]
    in_specs = [p_spec, w_spec, v_spec, v_spec]
    kernel = _block_kernel
    flops = 2 * M_pad * Kd_pad * Cp
    bytes_accessed = patches.size * 2 + w_mat.size * 2 + M_pad * Cp * 4

    if residual is not None:
        x_res, wr, br = residual
        Cr = x_res.shape[-1]
        Crp = _round_up(Cr, LANE)
        xr = _pad2d(x_res.reshape(M, Cr).astype(jnp.float32), M_pad, Crp)
        wrp = _pad2d(wr.astype(jnp.float32), Crp, Cp)
        brp = _pad2d(br.reshape(1, Cout).astype(jnp.float32), 1, Cp)
        inputs += [xr, wrp, brp]
        in_specs += [pl.BlockSpec((TM, Crp), lambda i, k: (i, 0)),
                     pl.BlockSpec((Crp, Cp), lambda i, k: (0, 0)),
                     v_spec]
        kernel = _block_res_kernel
        flops += 2 * M_pad * Crp * Cp
        bytes_accessed += xr.size * 4 + wrp.size * 4

    out = pl.pallas_call(
        kernel,
        out_shape=jax.ShapeDtypeStruct((M_pad, Cp), jnp.float32),
        grid=grid,
        in_specs=in_specs,
        out_specs=o_spec,
        scratch_shapes=[pltpu.VMEM((TM, Cp), jnp.float32)],
        compiler_params=pltpu.CompilerParams(
            dimension_semantics=("parallel", "arbitrary"),
            vmem_limit_bytes=32 * 1024 * 1024),
        cost_estimate=pl.CostEstimate(
            flops=int(flops),
            transcendentals=int(M_pad * Cp),
            bytes_accessed=int(bytes_accessed)),
    )(*inputs)
    return out[:M, :Cout].reshape(B, H, W, Cout)


def resnet_block_forward(x_nchw, params):
    """Pallas implementation of ResnetBlock.forward.  Input/output are NCHW."""
    x = jnp.transpose(x_nchw, (0, 2, 3, 1))                    # NCHW -> NHWC
    h = _run_block(x, params["w1"], params["b1"], params["g1"])
    y = _run_block(h, params["w2"], params["b2"], params["g2"],
                   residual=(x, params["wr"], params["br"]))   # fused 1x1 + add
    return jnp.transpose(y, (0, 3, 1, 2))                      # NHWC -> NCHW


# --------------------------- pure-JAX reference -----------------------------

def _ref_block(x_nhwc, w_hwio, b, g):
    conv = lax.conv_general_dilated(
        x_nhwc, w_hwio, window_strides=(1, 1),
        padding=[(PAD, PAD), (PAD, PAD)],
        dimension_numbers=("NHWC", "HWIO", "NHWC")) + b
    nrm = jnp.sqrt(jnp.sum(conv * conv, axis=-1, keepdims=True))
    y = conv / jnp.maximum(nrm, EPS) * g * (conv.shape[-1] ** 0.5)
    return y * jax.nn.sigmoid(y)


def _ref_forward(x_nchw, params):
    x = jnp.transpose(x_nchw, (0, 2, 3, 1))
    h = _ref_block(x, params["w1"], params["b1"], params["g1"])
    h = _ref_block(h, params["w2"], params["b2"], params["g2"])
    res = jnp.einsum("bhwc,cd->bhwd", x, params["wr"]) + params["br"]
    return jnp.transpose(h + res, (0, 3, 1, 2))


# --------------------------------- main --------------------------------------

if __name__ == "__main__":
    B, DIM, DIM_OUT, S = 2, 4, 8, 16

    key = jax.random.PRNGKey(0)
    k = jax.random.split(key, 8)

    params = {
        # block1: Conv2d(dim, dim_out, 21, padding=10) weights in HWIO
        "w1": jax.random.normal(k[0], (KSIZE, KSIZE, DIM, DIM_OUT), jnp.float32) * 0.02,
        "b1": jax.random.normal(k[1], (DIM_OUT,), jnp.float32) * 0.02,
        "g1": jnp.ones((DIM_OUT,), jnp.float32),                # RMSNorm.g init = ones
        # block2: Conv2d(dim_out, dim_out, 21, padding=10)
        "w2": jax.random.normal(k[2], (KSIZE, KSIZE, DIM_OUT, DIM_OUT), jnp.float32) * 0.02,
        "b2": jax.random.normal(k[3], (DIM_OUT,), jnp.float32) * 0.02,
        "g2": jnp.ones((DIM_OUT,), jnp.float32),
        # res_conv: Conv2d(dim, dim_out, 1)  (dim != dim_out)
        "wr": jax.random.normal(k[4], (DIM, DIM_OUT), jnp.float32) * 0.1,
        "br": jax.random.normal(k[5], (DIM_OUT,), jnp.float32) * 0.02,
    }

    x = jax.random.normal(k[6], (B, DIM, S, S), jnp.float32)    # NCHW like PyTorch

    out = jax.block_until_ready(resnet_block_forward(x, params))
    ref = jax.block_until_ready(_ref_forward(x, params))

    assert out.shape == (B, DIM_OUT, S, S), out.shape
    # bf16 MXU operands (f32 accumulate/epilogue) -> loosened tolerance vs f32 ref.
    max_err = float(jnp.max(jnp.abs(out - ref)))
    assert jnp.allclose(out, ref, atol=5e-2, rtol=5e-2), max_err

    print("KERNEL_OK")
</pallas_src>

<mosaic_0001>
module attributes {stable_mosaic.version = 11 : i64} {
  func.func @_block_kernel(%arg0: i32, %arg1: i32, %arg2: memref<256x896xbf16, #tpu.memory_space<vmem>>, %arg3: memref<896x128xbf16, #tpu.memory_space<vmem>>, %arg4: memref<1x128xf32, #tpu.memory_space<vmem>>, %arg5: memref<1x128xf32, #tpu.memory_space<vmem>>, %arg6: memref<256x128xf32, #tpu.memory_space<vmem>>, %arg7: memref<256x128xf32, #tpu.memory_space<vmem>>) attributes {dimension_semantics = [#tpu.dimension_semantics<parallel>, #tpu.dimension_semantics<arbitrary>], iteration_bounds = array<i64: 2, 2>, scalar_prefetch = 0 : i64, scratch_operands = 1 : i64, tpu.core_type = #tpu.core_type<tc>, window_params = [{transform_indices = @transform_0, window_bounds = array<i64: 256, 896>}, {transform_indices = @transform_1, window_bounds = array<i64: 896, 128>}, {pipeline_mode = #tpu.pipeline_mode<synchronous>, transform_indices = @transform_2, window_bounds = array<i64: 1, 128>}, {pipeline_mode = #tpu.pipeline_mode<synchronous>, transform_indices = @transform_3, window_bounds = array<i64: 1, 128>}, {transform_indices = @transform_4, window_bounds = array<i64: 256, 128>}]} {
    %c0_i32 = arith.constant 0 : i32
    %0 = arith.cmpi eq, %arg1, %c0_i32 : i32
    %1 = arith.extui %0 : i1 to i32
    %c0_i32_0 = arith.constant 0 : i32
    %2 = arith.cmpi ne, %1, %c0_i32_0 : i32
    scf.if %2 {
      %cst_9 = arith.constant 0.000000e+00 : f32
      %12 = vector.broadcast %cst_9 : f32 to vector<256x128xf32>
      %c0_10 = arith.constant 0 : index
      %c0_11 = arith.constant 0 : index
      %13 = vector.load %arg7[%c0_10, %c0_11] : memref<256x128xf32, #tpu.memory_space<vmem>>, vector<256x128xf32>
      tpu.vector_store %arg7[%c0_10, %c0_11], %12 {strides = array<i32>} : memref<256x128xf32, #tpu.memory_space<vmem>>, vector<256x128xf32>,
    } else {
    }
    %c0 = arith.constant 0 : index
    %c0_1 = arith.constant 0 : index
    %3 = vector.load %arg7[%c0, %c0_1] : memref<256x128xf32, #tpu.memory_space<vmem>>, vector<256x128xf32>
    %c0_2 = arith.constant 0 : index
    %c0_3 = arith.constant 0 : index
    %4 = vector.load %arg2[%c0_2, %c0_3] : memref<256x896xbf16, #tpu.memory_space<vmem>>, vector<256x896xbf16>
    %c0_4 = arith.constant 0 : index
    %c0_5 = arith.constant 0 : index
    %5 = vector.load %arg3[%c0_4, %c0_5] : memref<896x128xbf16, #tpu.memory_space<vmem>>, vector<896x128xbf16>
    %cst = arith.constant dense<0.000000e+00> : vector<256x128xf32>
    %6 = tpu.matmul %4, %5, %cst {dimension_numbers = #tpu.dot_dimension_numbers<[1], [0], [0], [1], [0, 0, 1, 1], [], []>} : vector<256x896xbf16>, vector<896x128xbf16>, vector<256x128xf32> -> vector<256x128xf32>
    %7 = arith.addf %3, %6 : vector<256x128xf32>
    %c0_6 = arith.constant 0 : index
    %c0_7 = arith.constant 0 : index
    %8 = vector.load %arg7[%c0_6, %c0_7] : memref<256x128xf32, #tpu.memory_space<vmem>>, vector<256x128xf32>
    tpu.vector_store %arg7[%c0_6, %c0_7], %7 {strides = array<i32>} : memref<256x128xf32, #tpu.memory_space<vmem>>, vector<256x128xf32>,
    %c1_i32 = arith.constant 1 : i32
    %9 = arith.cmpi eq, %arg1, %c1_i32 : i32
    %10 = arith.extui %9 : i1 to i32
    %c0_i32_8 = arith.constant 0 : i32
    %11 = arith.cmpi ne, %10, %c0_i32_8 : i32
    scf.if %11 {
      %c0_9 = arith.constant 0 : index
      %c0_10 = arith.constant 0 : index
      %12 = vector.load %arg7[%c0_9, %c0_10] : memref<256x128xf32, #tpu.memory_space<vmem>>, vector<256x128xf32>
      %c0_11 = arith.constant 0 : index
      %c0_12 = arith.constant 0 : index
      %13 = vector.load %arg4[%c0_11, %c0_12] : memref<1x128xf32, #tpu.memory_space<vmem>>, vector<1x128xf32>
      %c0_13 = arith.constant 0 : index
      %c0_14 = arith.constant 0 : index
      %14 = vector.load %arg5[%c0_13, %c0_14] : memref<1x128xf32, #tpu.memory_space<vmem>>, vector<1x128xf32>
      %15 = vector.broadcast %13 : vector<1x128xf32> to vector<256x128xf32>
      %16 = arith.addf %12, %15 : vector<256x128xf32>
      %17 = arith.mulf %16, %16 : vector<256x128xf32>
      %cst_15 = arith.constant dense<0.000000e+00> : vector<256xf32>
      %18 = vector.multi_reduction <add>, %17, %cst_15 [1] : vector<256x128xf32> to vector<256xf32>
      %19 = vector.shape_cast %18 : vector<256xf32> to vector<256x1xf32>
      %cst_16 = arith.constant 1.000000e-24 : f32
      %20 = vector.broadcast %cst_16 : f32 to vector<256x1xf32>
      %21 = arith.maximumf %19, %20 : vector<256x1xf32>
      %22 = math.rsqrt %21 : vector<256x1xf32>
      %23 = vector.broadcast %22 : vector<256x1xf32> to vector<256x128xf32>
      %24 = arith.mulf %16, %23 : vector<256x128xf32>
      %25 = vector.broadcast %14 : vector<1x128xf32> to vector<256x128xf32>
      %26 = arith.mulf %24, %25 : vector<256x128xf32>
      %27 = arith.negf %26 : vector<256x128xf32>
      %28 = math.exp %27 : vector<256x128xf32>
      %cst_17 = arith.constant 1.000000e+00 : f32
      %29 = vector.broadcast %cst_17 : f32 to vector<256x128xf32>
      %30 = arith.addf %29, %28 : vector<256x128xf32>
      %31 = arith.divf %29, %30 : vector<256x128xf32>
      %32 = arith.mulf %26, %31 : vector<256x128xf32>
      %c0_18 = arith.constant 0 : index
      %c0_19 = arith.constant 0 : index
      %33 = vector.load %arg6[%c0_18, %c0_19] : memref<256x128xf32, #tpu.memory_space<vmem>>, vector<256x128xf32>
      tpu.vector_store %arg6[%c0_18, %c0_19], %32 {strides = array<i32>} : memref<256x128xf32, #tpu.memory_space<vmem>>, vector<256x128xf32>,
    } else {
    }
    return
  }
  func.func @transform_0(%arg0: i32, %arg1: i32) -> (i32, i32) {
    %c0_i32 = arith.constant 0 : i32
    return %arg0, %arg1 : i32, i32
  }
  func.func @transform_1(%arg0: i32, %arg1: i32) -> (i32, i32) {
    %c0_i32 = arith.constant 0 : i32
    %c0_i32_0 = arith.constant 0 : i32
    return %arg1, %c0_i32 : i32, i32
  }
  func.func @transform_2(%arg0: i32, %arg1: i32) -> (i32, i32) {
    %c0_i32 = arith.constant 0 : i32
    %c0_i32_0 = arith.constant 0 : i32
    %c0_i32_1 = arith.constant 0 : i32
    return %c0_i32, %c0_i32_0 : i32, i32
  }
  func.func @transform_3(%arg0: i32, %arg1: i32) -> (i32, i32) {
    %c0_i32 = arith.constant 0 : i32
    %c0_i32_0 = arith.constant 0 : i32
    %c0_i32_1 = arith.constant 0 : i32
    return %c0_i32, %c0_i32_0 : i32, i32
  }
  func.func @transform_4(%arg0: i32, %arg1: i32) -> (i32, i32) {
    %c0_i32 = arith.constant 0 : i32
    %c0_i32_0 = arith.constant 0 : i32
    return %arg0, %c0_i32 : i32, i32
  }
}

</mosaic_0001>

<bundles_post_ra>
// kernel: tpu_custom_call.1
= control target key start
LH: loop header
LB: loop body
LE: loop exit
PB: predicated region body
PF: predicated region fallthrough
CT: control target
= control target key end

     0   :  { %s5662_s0 = inlined_call_operand.hbm [shape: bf16[512,1792], index: 0, kind: input, shape index: {}]   ;;  %s5663_s1 = inlined_call_operand.hbm [shape: bf16[1792,128], index: 1, kind: input, shape index: {}]   ;;  %s5664_s2 = inlined_call_operand.hbm [shape: f32[1,128], index: 2, kind: input, shape index: {}]   ;;  %s5665_s3 = inlined_call_operand.hbm [shape: f32[1,128], index: 3, kind: input, shape index: {}]   ;;  %s5666_s4 = inlined_call_operand.hbm [shape: f32[512,128], index: 4, kind: output, shape index: {}]  }
   0x1   :  { %5688 = sst [smem:[#allocation28_spill]] %s5662_s0 }
   0x2   :  { %5689 = sst [smem:[#allocation29_spill]] %s5664_s2 }
   0x3   :  { %5690 = sst [smem:[#allocation30_spill]] %s5665_s3 }
   0x4   :  { %5691 = sst [smem:[#allocation31_spill]] %s5666_s4 }
   0x5   :  { %9 = vsyncpa [#allocation4], 0 }
   0x6   :  { %11 = vsyncpa [#allocation4 + $0x1], 0 }
   0x7   :  { %12 = vsyncpa [#allocation7], 0 }
   0x8   :  { %14 = vsyncpa [#allocation7 + $0x1], 0 }
   0x9   :  { %15 = vsyncpa [#allocation10], 0 }
   0xa   :  { %16 = vsyncpa [#allocation5], 0 }
   0xb   :  { %18 = vsyncpa [#allocation5 + $0x1], 0  ;;  %s4472_s15 = smov 0   ;;  %s4474_s16 = smov 0  }
   0xc   :  { %s4476_s17 = smov 0   ;;  %s4478_s18 = smov 0  }
   0xd   :  { %s4480_s19 = smov 0   ;;  %s4482_s20 = smov 0  }
   0xe   :  { %s4484_s21 = smov 0   ;;  %s4486_s22 = smov 0  }
   0xf   :  { %s4488_s23 = smov 0   ;;  %s4490_s24 = smov 0  }
  0x10   :  { %s4492_s25 = smov 0   ;;  %s4494_s26 = smov 0  }
  0x11   :  { %s4496_s27 = smov 0   ;;  %s4498_s28 = smov 0  }
  0x12 LB: > { %5692 = sst [smem:[#allocation17_spill]] %s4380_s15  ;;  %s4539_s29 = sadd.s32 4294967295, %s4432_s28   ;;  %s4432_s28 = sphi %s4498_s28, %s24_s28   ;;  %s4428_s27 = sphi %s4496_s27, %s5758_s27   ;;  %s4424_s26 = sphi %s4494_s26, %s5757_s26   ;;  %s4420_s25 = sphi %s4492_s25, %s5745_s25   ;;  %s4416_s24 = sphi %s4490_s24, %s5756_s24   ;;  %s4412_s23 = sphi %s4488_s23, %s5755_s23   ;;  %s4408_s22 = sphi %s4486_s22, %s5754_s22   ;;  %s4404_s21 = sphi %s4484_s21, %s5753_s21   ;;  %s4400_s20 = sphi %s4482_s20, %s5752_s20   ;;  %s4396_s19 = sphi %s4480_s19, %s5751_s19   ;;  %s4392_s18 = sphi %s4478_s18, %s5744_s18   ;;  %s4388_s17 = sphi %s4476_s17, %s5750_s17   ;;  %s4384_s16 = sphi %s4474_s16, %s5749_s16   ;;  %s4380_s15 = sphi %s4472_s15, %s5743_s15  }
  0x13   : > { %5693 = sst [smem:[#allocation18_spill]] %s4384_s16  ;;  %s2937_s30 = sadd.s32 4294967294, %s4432_s28  }
  0x14   : > { %5694 = sst [smem:[#allocation19_spill]] %s4396_s19  ;;  %p5667_p0 = scmp.eq.s32.totalorder %s4432_s28, 0 }
  0x15   : > { %5695 = sst [smem:[#allocation20_spill]] %s4416_s24  ;;  %p58_p1 = scmp.ne.s32.totalorder %s4408_s22, %s4404_s21 }
  0x16   : > { %5696 = sst [smem:[#allocation21_spill]] %s4420_s25  ;;  %p5673_p2 = scmp.eq.s32.totalorder %s4539_s29, 0 }
  0x17   : > { %5697 = sst [smem:[#allocation22_spill]] %s4428_s27  ;;  %p78_p3 = scmp.ne.s32.totalorder %s4400_s20, %s4396_s19 }
  0x18   : > { %p84_p4 = scmp.ne.s32.totalorder %s4396_s19, %s4392_s18  ;;  %p4551_p5 = por %p5673_p2, %p58_p1 }
  0x19   : > { %p4558_p6 = por %p78_p3, %p5667_p0  ;;  %p149_p8 = scmp.ne.s32.totalorder %s4388_s17, %s4384_s16 }
  0x1a   : > { %s5698_s6 = scalar_select %p4551_p5, 1, 0 }
  0x1b   : > { %p4564_p7 = por %p84_p4, %p5673_p2  ;;  %p150_p9 = scmp.eq.s32.totalorder %s4539_s29, 3 }
  0x1c   : > { %p155_p10 = scmp.ne.s32.totalorder %s4384_s16, %s4380_s15  ;;  %p156_p11 = scmp.eq.s32.totalorder %s2937_s30, 3 }
  0x1d   : > { %s5700_s9 = scalar_select %p4564_p7, 1, 0 }
  0x1e   : > { %p4573_p12 = por %p150_p9, %p149_p8  ;;  %p2938_p13 = scmp.ge.s32.totalorder %s4432_s28, 1 }
  0x1f   : > { %5701 = sst [smem:[#allocation23_spill]] %s5700_s9  ;;  %p4578_p1 = por %p156_p11, %p155_p10 }
  0x20   : > { %s5702_s10 = scalar_select %p4573_p12, 1, 0 }
  0x21   : > { %s5704_s11 = scalar_select %p4578_p1, 1, 0 }
  0x22   : > { %5703 = sst [smem:[#allocation24_spill]] %s5702_s10  ;;  %p163_p3 = scmp.lt.s32.totalorder %s4432_s28, 5 }
  0x23   : > { %5705 = sst [smem:[#allocation25_spill]] %s5704_s11  ;;  %s4434_s13 = smov [#allocation8]  }
  0x24   : > { %p4583_p4 = pnand %p2938_p13, %p163_p3  ;;  %s176_s14 = sshll.u32 %s4434_s13, 4  ;;  %s177_s14 = int_to_ptr.vmem [resolvable:$true] %s176_s14 }
  0x25   : > { %p5674_p8 = scmp.lt.s32.totalorder %s4432_s28, 4  ;;  %s4435_s30 = smov [#allocation9]  }
  0x26   : > { %s5706_s12 = scalar_select %p4583_p4, 1, 0 }
  0x27   : > { %p3604_p0 = pneg %p4583_p4  ;;  %p4600_p10 = pnand %p5674_p8, %p4558_p6 }
  0x28   : > { %s187_s7 = sshll.u32 %s4435_s30, 4  ;;  %s5709_s2 = sld [smem:[#allocation29_spill]]  ;;  %s188_s7 = int_to_ptr.vmem [resolvable:$true] %s187_s7 }
  0x29   : > { %p4592_p9 = pnand %p3604_p0, %p5673_p2 }
  0x2a   : > { %s5708_s21 = scalar_select %p4600_p10, 1, 0 }
  0x2b   : > { %p4160_p11 = pneg %p4592_p9 }
  0x2e   : > { %s4158_s11 = scalar_lea.hbm %s5709_s2, 16 }
  0x2f   : > { %p4159_p0 = scmp.ne.s32.totalorder %s5709_s2, %s4158_s11  ;;  %p4165_p6 = scmp.lt.u32.totalorder %s4158_s11, %s5709_s2 }
  0x31   : > { %p4161_p13 = pnand %p4160_p11, %p4159_p0 }
  0x33   : > { %p4162_p3 = pneg %p4161_p13 }
  0x35   : > { %p4167_p2 = pnand %p4165_p6, %p4162_p3 }
  0x37   : > { %4170 = shalt.err (!%p4167_p2)
}
  0x38   : > { %s4171_s30 = scalar_lea.vmem %s177_s14, 16  ;;  %s4178_s4 = scalar_lea.vmem %s177_s14, 32 }
  0x39   : > { %p4172_p8 = scmp.ne.s32.totalorder %s177_s14, %s4171_s30  ;;  %p4179_p7 = scmp.lt.s32.totalorder %s177_s14, %s177_s14 }
  0x3a   : > { %p4180_p5 = scmp.lt.s32.totalorder %s4178_s4, %s4171_s30 }
  0x3b   : > { %p4174_p1 = pnand %p4172_p8, %p4160_p11 }
  0x3c   : > { %p4181_p4 = por %p4180_p5, %p4179_p7 }
  0x3d   : > { %p4175_p12 = pneg %p4174_p1 }
  0x3f   : > { %p4182_p10 = pnand %p4181_p4, %p4175_p12 }
  0x41   : > { %4185 = shalt.err (!%p4182_p10)
}
  0x42   : > { %3607 = dma.hbm_to_vmem [thread:$0]  (!%p4592_p9), %s5709_s2, 16, %s177_s14, [#allocation7]  }
  0x43   : > { %s5710_s3 = sld [smem:[#allocation30_spill]] }
  0x49   : > { %s4186_s13 = scalar_lea.hbm %s5710_s3, 16 }
  0x4a   : > { %p4187_p2 = scmp.ne.s32.totalorder %s5710_s3, %s4186_s13  ;;  %p4193_p12 = scmp.lt.u32.totalorder %s4186_s13, %s5710_s3 }
  0x4c   : > { %p4189_p5 = pnand %p4187_p2, %p4160_p11 }
  0x4e   : > { %p4190_p7 = pneg %p4189_p5 }
  0x50   : > { %p4195_p1 = pnand %p4193_p12, %p4190_p7 }
  0x52   : > { %4198 = shalt.err (!%p4195_p1)
}
  0x53   : > { %s4199_s14 = scalar_lea.vmem %s188_s7, 16  ;;  %s4206_s15 = scalar_lea.vmem %s188_s7, 32 }
  0x54   : > { %p4200_p4 = scmp.ne.s32.totalorder %s188_s7, %s4199_s14  ;;  %p4207_p0 = scmp.lt.s32.totalorder %s188_s7, %s188_s7 }
  0x55   : > { %p4208_p13 = scmp.lt.s32.totalorder %s4206_s15, %s4199_s14 }
  0x56   : > { %p4202_p8 = pnand %p4200_p4, %p4160_p11 }
  0x57   : > { %p4209_p3 = por %p4208_p13, %p4207_p0 }
  0x58   : > { %p4203_p10 = pneg %p4202_p8 }
  0x5a   : > { %p4210_p6 = pnand %p4209_p3, %p4203_p10 }
  0x5c   : > { %4213 = shalt.err (!%p4210_p6)
}
  0x5d   : > { %3610 = dma.hbm_to_vmem [thread:$0]  (!%p4592_p9), %s5710_s3, 16, %s188_s7, [#allocation10]  }
  0x5e   : > { %s33_s10 = sadd.s32 1, %s4424_s26  ;;  %s36_s18 = sadd.s32 1, %s4428_s27 }
  0x5f   : > { %p34_p11 = scmp.ge.s32.totalorder %s33_s10, 2  ;;  %s45_s11 = sadd.s32 1, %s4412_s23 }
  0x60   : > { %p52_p2 = scmp.ne.s32.totalorder %s4412_s23, %s4408_s22  ;;  %p5712_p5 = scmp.eq.s32.totalorder %s4432_s28, 0 }
  0x61   : > { %s5760_s10 = smov (%p34_p11, %s33_s10), 0  ;;  %s5762_s18 = smov (!%p34_p11, %s36_s18), %s4428_s27 }
  0x62   : > { %5711 = sst [smem:[#allocation26_spill]] %s5760_s10  ;;  %s41_s13 = ssub.s32 %s4424_s26, %s5760_s10 }
  0x63   : > { %p4658_p7 = por %p5712_p5, %p52_p2  ;;  %p38_p9 = scmp.ge.s32.totalorder %s5762_s18, 2 }
  0x64   : > { %p69_p12 = scmp.eq.s32.totalorder %s41_s13, 0  ;;  %s198_s7 = sand.u32 1, %s4412_s23  }
  0x65   : > { %s204_s30 = smul.u32 7, %s4424_s26  ;;  %s5764_s18 = smov (%p38_p9, %s5762_s18), 0 }
  0x66   : > { %5714 = sst [smem:[#allocation27_spill]] %s5764_s18  ;;  %s5715_s4 = sadd.s32 1, %s4400_s20 }
  0x67   : > { %s4669_s14 = scalar_select %p69_p12, %s4400_s20, %s5715_s4  }
  0x68   : > { %s40_s15 = ssub.s32 %s4428_s27, %s5764_s18  ;;  %s3585_s5 = smul.u32 896, %s198_s7 }
  0x69   : > { %s42_s25 = sor.u32 %s41_s13, %s40_s15  ;;  %p137_p1 = scmp.eq.s32.totalorder %s40_s15, 0 }
  0x6a   : > { %p43_p4 = scmp.eq.s32.totalorder %s42_s25, 0  ;;  %s5716_s2 = sadd.s32 1, %s4388_s17 }
  0x6b   : > { %s4676_s3 = scalar_select %p137_p1, %s4388_s17, %s5716_s2  }
  0x6c   : > { %s4679_s10 = scalar_select %p43_p4, %s4412_s23, %s45_s11  }
  0x6d   : > { %s3586_s24 = smul.u32 448, %s4428_s27  ;;  %s202_s16 = scalar_lea.vmem [#allocation3], %s3585_s5 }
  0x6e   : > { %s212_s9 = sshll.u32 %s202_s16, 4  ;;  %p5717_p8 = scmp.lt.s32.totalorder %s4432_s28, 4  ;;  %s4690_s9 = int_to_ptr.vmem [resolvable:$true] %s212_s9 }
  0x6f   : > { %s209_s13 = sadd.s32 %s3586_s24, %s204_s30  ;;  %s5719_s0 = sld [smem:[#allocation28_spill]] }
  0x70   : > { %p4686_p10 = pnand %p5717_p8, %p4658_p7  ;;  %s2944_s4 = sshll.u32 %s209_s13, 6 }
  0x71   : > { %s4697_s16 = scalar_lea.sflag [#allocation4], %s198_s7 }
  0x72   : > { %p4216_p13 = pneg %p4686_p10 }
  0x75   : > { %s4695_s11 = scalar_lea.hbm %s5719_s0, %s2944_s4  ;;  %s4219_s25 = scalar_lea.hbm %s5719_s0, 57344 }
  0x76   : > { %s4214_s8 = scalar_lea.hbm %s4695_s11, 14336  ;;  %p4220_p11 = scmp.lt.u32.totalorder %s4695_s11, %s5719_s0 }
  0x77   : > { %p4215_p0 = scmp.ne.s32.totalorder %s4695_s11, %s4214_s8  ;;  %p4221_p2 = scmp.lt.u32.totalorder %s4219_s25, %s4214_s8 }
  0x78   : > { %p4223_p7 = scmp.lt.u32.totalorder %s4214_s8, %s4695_s11 }
  0x79   : > { %p4217_p3 = pnand %p4216_p13, %p4215_p0  ;;  %p4222_p5 = por %p4221_p2, %p4220_p11 }
  0x7b   : > { %p4218_p6 = pneg %p4217_p3  ;;  %p4224_p9 = por %p4223_p7, %p4222_p5 }
  0x7d   : > { %p4225_p12 = pnand %p4224_p9, %p4218_p6 }
  0x7f   : > { %4228 = shalt.err (!%p4225_p12)
}
  0x80   : > { %s4229_s7 = scalar_lea.vmem %s4690_s9, 14336  ;;  %s4436_s4 = smov [#allocation3]  }
  0x81   : > { %p4230_p1 = scmp.ne.s32.totalorder %s4690_s9, %s4229_s7  ;;  %s4234_s15 = sshll.u32 %s4436_s4, 4  ;;  %s4235_s15 = int_to_ptr.vmem [resolvable:$false] %s4234_s15 }
  0x82   : > { %s4236_s2 = scalar_lea.vmem %s4235_s15, 28672  ;;  %p4237_p0 = scmp.lt.s32.totalorder %s4690_s9, %s4235_s15 }
  0x83   : > { %p4232_p4 = pnand %p4230_p1, %p4216_p13  ;;  %p4238_p3 = scmp.lt.s32.totalorder %s4236_s2, %s4229_s7 }
  0x85   : > { %p4233_p8 = pneg %p4232_p4  ;;  %p4239_p11 = por %p4238_p3, %p4237_p0 }
  0x87   : > { %p4240_p2 = pnand %p4239_p11, %p4233_p8 }
  0x89   : > { %4243 = shalt.err (!%p4240_p2)
}
  0x8a   : > { %s4437_s8 = smov 896   ;;  %s4438_s24 = smov 448  }
  0x8b   : > { %s4439_s30 = smov 28   ;;  %s222_s25 = sand.u32 1, %s4432_s28  }
  0x8c   : > { %3614 = dma.hbm_to_vmem [thread:$0]  (!%p4686_p10), %s4695_s11, 14336, %s4690_s9, %s4697_s16, %s4437_s8, %s4438_s24, %s4439_s30  }
  0x8d   : > { %s224_s5 = sand.u32 1, %s4400_s20   ;;  %s3159_s7 = smul.u32 7168, %s4424_s26 }
  0x8e   : > { %s3587_s13 = smul.u32 448, %s224_s5  ;;  %s4735_s27 = scalar_lea.sflag [#allocation7], %s222_s25 }
  0x8f   : > { %s4731_s2 = scalar_lea.hbm %s5663_s1, %s3159_s7  ;;  %p5720_p13 = scmp.ne.s32.totalorder %s5708_s21, 0 }
  0x90   : > { %s226_s0 = scalar_lea.vmem [#allocation6], %s3587_s13  ;;  %s4244_s19 = scalar_lea.hbm %s4731_s2, 7168 }
  0x91   : > { %s233_s18 = sshll.u32 %s226_s0, 4  ;;  %p4245_p10 = scmp.ne.s32.totalorder %s4731_s2, %s4244_s19  ;;  %s4733_s18 = int_to_ptr.vmem [resolvable:$true] %s233_s18 }
  0x92   : > { %p4246_p6 = pneg %p5720_p13  ;;  %s4249_s16 = scalar_lea.hbm %s5663_s1, 14336 }
  0x93   : > { %p4250_p9 = scmp.lt.u32.totalorder %s4731_s2, %s5663_s1  ;;  %p4251_p12 = scmp.lt.u32.totalorder %s4249_s16, %s4244_s19 }
  0x94   : > { %p4247_p5 = pnand %p4246_p6, %p4245_p10  ;;  %p4253_p4 = scmp.lt.u32.totalorder %s4244_s19, %s4731_s2 }
  0x95   : > { %p4252_p1 = por %p4251_p12, %p4250_p9 }
  0x96   : > { %p4248_p7 = pneg %p4247_p5 }
  0x97   : > { %p4254_p8 = por %p4253_p4, %p4252_p1 }
  0x99   : > { %p4255_p0 = pnand %p4254_p8, %p4248_p7 }
  0x9b   : > { %4258 = shalt.err (!%p4255_p0)
}
  0x9c   : > { %s4259_s0 = scalar_lea.vmem %s4733_s18, 7168  ;;  %s4440_s30 = smov [#allocation6]  }
  0x9d   : > { %p4260_p3 = scmp.ne.s32.totalorder %s4733_s18, %s4259_s0  ;;  %s4264_s25 = sshll.u32 %s4440_s30, 4  ;;  %s4265_s25 = int_to_ptr.vmem [resolvable:$false] %s4264_s25 }
  0x9e   : > { %s4266_s5 = scalar_lea.vmem %s4265_s25, 14336  ;;  %p4267_p10 = scmp.lt.s32.totalorder %s4733_s18, %s4265_s25 }
  0x9f   : > { %p4262_p11 = pnand %p4260_p3, %p4246_p6  ;;  %p4268_p5 = scmp.lt.s32.totalorder %s4266_s5, %s4259_s0 }
  0xa1   : > { %p4263_p2 = pneg %p4262_p11  ;;  %p4269_p9 = por %p4268_p5, %p4267_p10 }
  0xa3   : > { %p4270_p12 = pnand %p4269_p9, %p4263_p2 }
  0xa5   : > { %4273 = shalt.err (!%p4270_p12)
}
  0xa6   : > { %s4441_s13 = smov 64   ;;  %s4442_s7 = smov 4  }
  0xa7   : > { %3617 = dma.hbm_to_vmem [thread:$0]  (!%p5720_p13), %s4731_s2, 7168, %s4733_s18, %s4735_s27, %s4441_s13, %s4441_s13, %s4442_s7  }
  0xa8   : > { %p5721_p6 = scmp.ne.s32.totalorder %s5706_s12, 0 }
  0xa9   : > { %s247_s4 = sand.u32 (!%p5721_p6), 1, %s4408_s22   ;;  %p5722_p7 = scmp.ne.s32.totalorder (!%p5721_p6), %s5698_s6, 0 }
  0xaa   : > { %245 = sbr.rel (%p5721_p6) target bundleno = 999 (0x3e7), region = 36  ;;  %s248_s19 = scalar_lea.sflag (!%p5721_p6), [#allocation4], %s247_s4 }
  0xab   : > { %s3588_s15 = smul.u32 (!%p5721_p6), 896, %s247_s4 }
  0xad   : > { %s4766_s9 = scalar_lea.vmem (!%p5721_p6), [#allocation3], %s3588_s15 }
  0xb1   : > { %4359 = dma.done.wait (%p5722_p7), %s248_s19, 14336  }
  0xb2   : > { %4361 = vsyncadd (%p5722_p7), %s248_s19, 4294952960  ;;  %s5723_s11 = sld [smem:[#allocation19_spill]]  ;;  %s5724_s16 = sld [smem:[#allocation23_spill]] }
  0xb3   : > { %s256_s21 = sand.u32 1, %s4539_s29  }
  0xb4   : > { %s257_s12 = scalar_lea.sflag [#allocation7], %s256_s21 }
  0xb8   : > { %s258_s27 = sand.u32 1, %s5723_s11   ;;  %p5725_p13 = scmp.ne.s32.totalorder %s5724_s16, 0 }
  0xb9   : > { %s3589_s18 = smul.u32 448, %s258_s27 }
  0xbb   : > { %s4774_s2 = scalar_lea.vmem [#allocation6], %s3589_s18 }
  0xbc   : > { %4363 = dma.done.wait (%p5725_p13), %s257_s12, 7168  }
  0xbd   : > { %4365 = vsyncadd (%p5725_p13), %s257_s12, 4294960128  ;;  %p5726_p1 = scmp.eq.s32.totalorder %s4539_s29, 0 }
  0xbf   : > { %4367 = dma.done.wait (%p5726_p1), [#allocation7], 16   ;;  %p5727_p4 = pmov %p5726_p1 }
  0xc0   : > { %p5728_p8 = pmov %p5726_p1 }
  0xc1   : > { %4369 = vsyncadd (%p5727_p4), [#allocation7], 4294967280 }
  0xc2   : > { %4371 = dma.done.wait (%p5728_p8), [#allocation10], 16   ;;  %p5729_p0 = pmov %p5726_p1 }
  0xc3   : > { %s5730_s6 = sld [smem:[#allocation18_spill]]  ;;  %s5731_s30 = sld [smem:[#allocation20_spill]] }
  0xc4   : > { %4373 = vsyncadd (%p5729_p0), [#allocation10], 4294967280 }
  0xc9   : > { %s295_s8 = sand.u32 1, %s5730_s6   ;;  %p2950_p3 = scmp.ne.s32.totalorder %s5731_s30, 0 }
  0xca   : > { %s2949_s24 = sshll.u32 %s295_s8, 8  ;;  %v4443_v0 = vmov (!%p2950_p3), 0.0  }
  0xcb   : > { %s4791_s0 = scalar_lea.vmem [#allocation11], %s2949_s24  ;;  %306 = sbr.rel (%p2950_p3) target bundleno = 219 (0xdb), region = 56  ;;  %307 = vst [vmem:[#allocation2] sm:$0xff] (!%p2950_p3), %v4443_v0  ;;  %308 = vst [vmem:[#allocation2 + $0x8] sm:$0xff] (!%p2950_p3), %v4443_v0 }
  0xcc   : > { %309 = vst [vmem:[#allocation2 + $0x10] sm:$0xff] (!%p2950_p3), %v4443_v0  ;;  %310 = vst [vmem:[#allocation2 + $0x18] sm:$0xff] (!%p2950_p3), %v4443_v0 }
  0xcd   : > { %311 = vst [vmem:[#allocation2 + $0x20] sm:$0xff] (!%p2950_p3), %v4443_v0  ;;  %312 = vst [vmem:[#allocation2 + $0x28] sm:$0xff] (!%p2950_p3), %v4443_v0 }
  0xce   : > { %313 = vst [vmem:[#allocation2 + $0x30] sm:$0xff] (!%p2950_p3), %v4443_v0  ;;  %314 = vst [vmem:[#allocation2 + $0x38] sm:$0xff] (!%p2950_p3), %v4443_v0 }
  0xcf   : > { %315 = vst [vmem:[#allocation2 + $0x40] sm:$0xff] (!%p2950_p3), %v4443_v0  ;;  %316 = vst [vmem:[#allocation2 + $0x48] sm:$0xff] (!%p2950_p3), %v4443_v0 }
  0xd0   : > { %317 = vst [vmem:[#allocation2 + $0x50] sm:$0xff] (!%p2950_p3), %v4443_v0  ;;  %318 = vst [vmem:[#allocation2 + $0x58] sm:$0xff] (!%p2950_p3), %v4443_v0 }
  0xd1   : > { %319 = vst [vmem:[#allocation2 + $0x60] sm:$0xff] (!%p2950_p3), %v4443_v0  ;;  %320 = vst [vmem:[#allocation2 + $0x68] sm:$0xff] (!%p2950_p3), %v4443_v0 }
  0xd2   : > { %321 = vst [vmem:[#allocation2 + $0x70] sm:$0xff] %v4443_v0  ;;  %322 = vst [vmem:[#allocation2 + $0x78] sm:$0xff] %v4443_v0 }
  0xd3   : > { %323 = vst [vmem:[#allocation2 + $0x80] sm:$0xff] %v4443_v0  ;;  %324 = vst [vmem:[#allocation2 + $0x88] sm:$0xff] %v4443_v0 }
  0xd4   : > { %325 = vst [vmem:[#allocation2 + $0x90] sm:$0xff] %v4443_v0  ;;  %326 = vst [vmem:[#allocation2 + $0x98] sm:$0xff] %v4443_v0 }
  0xd5   : > { %327 = vst [vmem:[#allocation2 + $0xa0] sm:$0xff] %v4443_v0  ;;  %328 = vst [vmem:[#allocation2 + $0xa8] sm:$0xff] %v4443_v0 }
  0xd6   : > { %329 = vst [vmem:[#allocation2 + $0xb0] sm:$0xff] %v4443_v0  ;;  %330 = vst [vmem:[#allocation2 + $0xb8] sm:$0xff] %v4443_v0 }
  0xd7   : > { %331 = vst [vmem:[#allocation2 + $0xc0] sm:$0xff] %v4443_v0  ;;  %332 = vst [vmem:[#allocation2 + $0xc8] sm:$0xff] %v4443_v0 }
  0xd8   : > { %333 = vst [vmem:[#allocation2 + $0xd0] sm:$0xff] %v4443_v0  ;;  %334 = vst [vmem:[#allocation2 + $0xd8] sm:$0xff] %v4443_v0 }
  0xd9   : > { %335 = vst [vmem:[#allocation2 + $0xe0] sm:$0xff] %v4443_v0  ;;  %336 = vst [vmem:[#allocation2 + $0xe8] sm:$0xff] %v4443_v0 }
  0xda   : > { %337 = vst [vmem:[#allocation2 + $0xf0] sm:$0xff] %v4443_v0  ;;  %338 = vst [vmem:[#allocation2 + $0xf8] sm:$0xff] %v4443_v0 }
  0xdb PF: > { %v3750_v1 = vld [vmem:[%s4774_s2 + $0x40] sm:$0xff]   ;;  %v3752_v3 = vld [vmem:[%s4774_s2 + $0x48] sm:$0xff]   ;;  %v3754_v5 = vld [vmem:[%s4774_s2 + $0x50] sm:$0xff]   ;;  %s5732_s29 = sld [smem:[#allocation20_spill]] }
  0xdc   : > { %v3751_v2 = vld [vmem:[%s4774_s2] sm:$0xff]   ;;  %3161 = vmatprep.subr.bf16.mxu0 %v3750_v1  ;;  %3569 = vmatprep.subr.bf16.mxu1 %v3750_v1  ;;  %v3753_v4 = vld [vmem:[%s4774_s2 + $0x8] sm:$0xff]   ;;  %v3755_v6 = vld [vmem:[%s4774_s2 + $0x10] sm:$0xff]  }
  0xdd   : > { %3162 = vmatpush3.bf16.msra.mxu0 %v3751_v2  ;;  %3577 = vmatpush3.bf16.msra.mxu1 %v3751_v2  ;;  %v3756_v7 = vld [vmem:[%s4774_s2 + $0x58] sm:$0xff]   ;;  %v3758_v9 = vld [vmem:[%s4774_s2 + $0x60] sm:$0xff]   ;;  %v3760_v11 = vld [vmem:[%s4774_s2 + $0x68] sm:$0xff]  }
  0xde   : > { %3163 = vmatprep.subr.bf16.mxu0 %v3752_v3  ;;  %3570 = vmatprep.subr.bf16.mxu1 %v3752_v3  ;;  %v3757_v8 = vld [vmem:[%s4774_s2 + $0x18] sm:$0xff]   ;;  %v3759_v10 = vld [vmem:[%s4774_s2 + $0x20] sm:$0xff]   ;;  %v3761_v14 = vld [vmem:[%s4774_s2 + $0x28] sm:$0xff]  }
  0xdf   : > { %v3768_v12 = vld [vmem:[%s4766_s9 + $0x4] ss:$28 sps:$4 sm:$0xff]   ;;  %v3762_v15 = vld [vmem:[%s4774_s2 + $0x70] sm:$0xff]   ;;  %v3764_v17 = vld [vmem:[%s4774_s2 + $0x78] sm:$0xff]  }
  0xe0   : > { %v3771_v13 = vld [vmem:[%s4766_s9 + $0x2a4] ss:$28 sps:$4 sm:$0xff]   ;;  %1555 = vmatprep.mubr.bf16.mxu0 %v3768_v12  ;;  %v3763_v16 = vld [vmem:[%s4774_s2 + $0x30] sm:$0xff]   ;;  %v3765_v18 = vld [vmem:[%s4774_s2 + $0x38] sm:$0xff]  }
  0xe1   : > { %3164 = vmatpush3.bf16.msra.mxu0 %v3753_v4  ;;  %3578 = vmatpush3.bf16.msra.mxu1 %v3753_v4  ;;  %v3772_v19 = vld [vmem:[%s4774_s2 + $0xc0] sm:$0xff]   ;;  %v3776_v25 = vld [vmem:[%s4774_s2 + $0xc8] sm:$0xff]   ;;  %v3778_v26 = vld [vmem:[%s4766_s9 + $0x3c] ss:$28 sps:$4 sm:$0xff]   ;;  %p3119_p11 = scmp.ne.s32.totalorder %s5732_s29, 1 }
  0xe2   : > { %3165 = vmatprep.subr.bf16.mxu0 %v3754_v5  ;;  %3571 = vmatprep.subr.bf16.mxu1 %v3754_v5  ;;  %v3766_v20 = vld [vmem:[%s4766_s9] ss:$28 sps:$4 sm:$0xff]   ;;  %v3787_v28 = vld [vmem:[%s4774_s2 + $0x148] sm:$0xff]   ;;  %v3782_v31 = vld [vmem:[%s4766_s9 + $0x38] ss:$28 sps:$4 sm:$0xff]  }
  0xe3   : > { %1651 = vmatprep.mubr.bf16.mxu1 %v3771_v13  ;;  %v3769_v21 = vld [vmem:[%s4766_s9 + $0x2a0] ss:$28 sps:$4 sm:$0xff]   ;;  %v3777_v29 = vld [vmem:[%s4774_s2 + $0x88] sm:$0xff]   ;;  %v3783_v32 = vld [vmem:[%s4766_s9 + $0x2d8] ss:$28 sps:$4 sm:$0xff]  }
  0xe4   : > { %v3773_v22 = vld [vmem:[%s4774_s2 + $0x140] sm:$0xff]   ;;  %v3780_v27 = vld [vmem:[%s4766_s9 + $0x2dc] ss:$28 sps:$4 sm:$0xff]   ;;  %v3789_v30 = vld [vmem:[%s4774_s2 + $0x108] sm:$0xff]  }
  0xe5   : > { %3166 = vmatpush3.bf16.msra.mxu0 %v3755_v6  ;;  %3579 = vmatpush3.bf16.msra.mxu1 %v3755_v6  ;;  %v3774_v23 = vld [vmem:[%s4774_s2 + $0x80] sm:$0xff]   ;;  %v3784_v33 = vld [vmem:[%s4774_s2 + $0xd0] sm:$0xff]   ;;  %v3786_v35 = vld [vmem:[%s4774_s2 + $0xd8] sm:$0xff]  }
  0xe6   : > { %3167 = vmatprep.subr.bf16.mxu0 %v3756_v7  ;;  %3572 = vmatprep.subr.bf16.mxu1 %v3756_v7  ;;  %v3775_v24 = vld [vmem:[%s4774_s2 + $0x100] sm:$0xff]   ;;  %v3785_v34 = vld [vmem:[%s4774_s2 + $0x90] sm:$0xff]   ;;  %v3788_v38 = vld [vmem:[%s4774_s2 + $0x98] sm:$0xff]  }
  0xe7   : > { %v3790_v36 = vld [vmem:[%s4766_s9 + $0x74] ss:$28 sps:$4 sm:$0xff]   ;;  %v3796_v39 = vld [vmem:[%s4774_s2 + $0xe0] sm:$0xff]   ;;  %v3798_v44 = vld [vmem:[%s4774_s2 + $0xe8] sm:$0xff]  }
  0xe8   : > { %v3792_v37 = vld [vmem:[%s4766_s9 + $0x314] ss:$28 sps:$4 sm:$0xff]   ;;  %v3797_v43 = vld [vmem:[%s4774_s2 + $0xa0] sm:$0xff]   ;;  %v3800_v46 = vld [vmem:[%s4766_s9 + $0xac] ss:$28 sps:$4 sm:$0xff]  }
  0xe9   : > { %3168 = vmatpush3.bf16.msra.mxu0 %v3757_v8  ;;  %3580 = vmatpush3.bf16.msra.mxu1 %v3757_v8  ;;  %v3794_v40 = vld [vmem:[%s4766_s9 + $0x70] ss:$28 sps:$4 sm:$0xff]   ;;  %v3804_v50 = vld [vmem:[%s4766_s9 + $0xa8] ss:$28 sps:$4 sm:$0xff]   ;;  %v3818_v52 = vld [vmem:[%s4774_s2 + $0x158] sm:$0xff]  }
  0xea   : > { %3169 = vmatprep.subr.bf16.mxu0 %v3758_v9  ;;  %3573 = vmatprep.subr.bf16.mxu1 %v3758_v9  ;;  %v3795_v41 = vld [vmem:[%s4766_s9 + $0x310] ss:$28 sps:$4 sm:$0xff]   ;;  %v3805_v51 = vld [vmem:[%s4766_s9 + $0x348] ss:$28 sps:$4 sm:$0xff]   ;;  %v3820_v54 = vld [vmem:[%s4774_s2 + $0x118] sm:$0xff]  }
  0xeb   : > { %v3807_v42 = vld [vmem:[%s4774_s2 + $0x150] sm:$0xff]   ;;  %v3802_v47 = vld [vmem:[%s4766_s9 + $0x34c] ss:$28 sps:$4 sm:$0xff]   ;;  %v3812_v55 = vld [vmem:[%s4766_s9 + $0xe4] ss:$28 sps:$4 sm:$0xff]  }
  0xec   : > { %v3809_v45 = vld [vmem:[%s4774_s2 + $0x110] sm:$0xff]   ;;  %v3799_v48 = vld [vmem:[%s4774_s2 + $0xa8] sm:$0xff]   ;;  %v3810_v56 = vld [vmem:[%s4774_s2 + $0xf8] sm:$0xff]  }
  0xed   : > { %3170 = vmatpush3.bf16.msra.mxu0 %v3759_v10  ;;  %3581 = vmatpush3.bf16.msra.mxu1 %v3759_v10  ;;  %v3806_v49 = vld [vmem:[%s4774_s2 + $0xf0] sm:$0xff]   ;;  %v3816_v57 = vld [vmem:[%s4766_s9 + $0xc] ss:$28 sps:$4 sm:$0xff]   ;;  %v3811_v58 = vld [vmem:[%s4774_s2 + $0xb8] sm:$0xff]  }
  0xee   : > { %3171 = vmatprep.subr.bf16.mxu0 %v3760_v11  ;;  %3574 = vmatprep.subr.bf16.mxu1 %v3760_v11  ;;  %v3808_v53 = vld [vmem:[%s4774_s2 + $0xb0] sm:$0xff]   ;;  %v3819_v59 = vld [vmem:[%s4774_s2 + $0x180] sm:$0xff]   ;;  %v3821_v0 = vld [vmem:[%s4766_s9 + $0x11c] ss:$28 sps:$4 sm:$0xff]  }
  0xef   : > { %v3814_v60 = vld [vmem:[%s4766_s9 + $0x8] ss:$28 sps:$4 sm:$0xff]   ;;  %v3817_v63 = vld [vmem:[%s4766_s9 + $0xe0] ss:$28 sps:$4 sm:$0xff]   ;;  %v3825_v5 = vld [vmem:[%s4766_s9 + $0x118] ss:$28 sps:$4 sm:$0xff]  }
  0xf0   : > { %v3833_v61 = vld [vmem:[%s4774_s2 + $0x160] sm:$0xff]   ;;  %v3835_v2 = vld [vmem:[%s4774_s2 + $0x188] sm:$0xff]   ;;  %v3827_v7 = vld [vmem:[%s4766_s9 + $0x154] ss:$28 sps:$4 sm:$0xff]  }
  0xf1   : > { %3172 = vmatpush3.bf16.msra.mxu0 %v3761_v14  ;;  %3582 = vmatpush3.bf16.msra.mxu1 %v3761_v14  ;;  %v3834_v62 = vld [vmem:[%s4774_s2 + $0x120] sm:$0xff]   ;;  %v3842_v3 = vld [vmem:[%s4774_s2 + $0x168] sm:$0xff]   ;;  %v3850_v8 = vld [vmem:[%s4774_s2 + $0x190] sm:$0xff]  }
  0xf2   : > { %3173 = vmatprep.subr.bf16.mxu0 %v3762_v15  ;;  %3575 = vmatprep.subr.bf16.mxu1 %v3762_v15  ;;  %v3823_v1 = vld [vmem:[%s4766_s9 + $0x44] ss:$28 sps:$4 sm:$0xff]   ;;  %v3843_v4 = vld [vmem:[%s4774_s2 + $0x128] sm:$0xff]   ;;  %v3829_v9 = vld [vmem:[%s4766_s9 + $0x7c] ss:$28 sps:$4 sm:$0xff]  }
  0xf3   : > { %v3826_v6 = vld [vmem:[%s4766_s9 + $0x40] ss:$28 sps:$4 sm:$0xff]   ;;  %v3857_v10 = vld [vmem:[%s4774_s2 + $0x170] sm:$0xff]   ;;  %v3836_v14 = vld [vmem:[%s4766_s9 + $0x18c] ss:$28 sps:$4 sm:$0xff]  }
  0xf4   : > { %v3858_v11 = vld [vmem:[%s4774_s2 + $0x130] sm:$0xff]  }
  0xf5   : > { %3174 = vmatpush3.bf16.msra.mxu0 %v3763_v16  ;;  %3583 = vmatpush3.bf16.msra.mxu1 %v3763_v16  ;;  %v3831_v12 = vld [vmem:[%s4766_s9 + $0x150] ss:$28 sps:$4 sm:$0xff]   ;;  %v3832_v13 = vld [vmem:[%s4766_s9 + $0x78] ss:$28 sps:$4 sm:$0xff]  }
  0xf6   : > { %3175 = vmatprep.subr.bf16.mxu0 %v3764_v17  ;;  %3576 = vmatprep.subr.bf16.mxu1 %v3764_v17  ;;  %v3838_v15 = vld [vmem:[%s4766_s9 + $0xb4] ss:$28 sps:$4 sm:$0xff]   ;;  %v3865_v16 = vld [vmem:[%s4774_s2 + $0x178] sm:$0xff]  }
  0xf7   : > { %v3866_v17 = vld [vmem:[%s4774_s2 + $0x198] sm:$0xff]  }
  0xf9   : > { %3176 = vmatpush3.bf16.msra.mxu0 %v3765_v18  ;;  %3584 = vmatpush3.bf16.msra.mxu1 %v3765_v18  ;;  %v3867_v18 = vld [vmem:[%s4774_s2 + $0x138] sm:$0xff]  }
  0xfa   : > { %3273 = vmatprep.subr.bf16.mxu1 %v3772_v19  ;;  %3385 = vmatprep.subr.bf16.mxu0 %v3773_v22  ;;  %v3840_v19 = vld [vmem:[%s4766_s9 + $0x188] ss:$28 sps:$4 sm:$0xff]  }
  0xfb   : > { %v3846_v22 = vld [vmem:[%s4766_s9 + $0xec] ss:$28 sps:$4 sm:$0xff]  }
  0xfc   : > { %1556 = vmatmul.mubr.bf16.vlgmr.msra.gmra.mrb[0].mxu0 %v3766_v20  ;;  %1652 = vmatmul.mubr.bf16.vlgmr.msra.gmra.mrb[0].mxu1 %v3769_v21  ;;  %v3841_v20 = vld [vmem:[%s4766_s9 + $0xb0] ss:$28 sps:$4 sm:$0xff]   ;;  %v3844_v21 = vld [vmem:[%s4766_s9 + $0x1c4] ss:$28 sps:$4 sm:$0xff]  }
  0xfd   : > { %3274 = vmatpush3.bf16.msra.mxu1 %v3774_v23  ;;  %3386 = vmatpush3.bf16.msra.mxu0 %v3775_v24  ;;  %v3880_v23 = vld [vmem:[%s4774_s2 + $0x1a0] sm:$0xff]  }
  0xfe   : > { %3275 = vmatprep.subr.bf16.mxu1 %v3776_v25  ;;  %1563 = vmatprep.mubr.bf16.mxu0 %v3778_v26  ;;  %v3848_v24 = vld [vmem:[%s4766_s9 + $0x1c0] ss:$28 sps:$4 sm:$0xff]   ;;  %v3849_v25 = vld [vmem:[%s4766_s9 + $0xe8] ss:$28 sps:$4 sm:$0xff]  }
  0xff   : > { %1659 = vmatprep.mubr.bf16.mxu1 %v3780_v27  ;;  %3387 = vmatprep.subr.bf16.mxu0 %v3787_v28  ;;  %v3893_v26 = vld [vmem:[%s4774_s2 + $0x1a8] sm:$0xff]   ;;  %v3851_v27 = vld [vmem:[%s4766_s9 + $0x1fc] ss:$28 sps:$4 sm:$0xff]   ;;  %v3853_v28 = vld [vmem:[%s4766_s9 + $0x124] ss:$28 sps:$4 sm:$0xff]  }
 0x101   : > { %3276 = vmatpush3.bf16.msra.mxu1 %v3777_v29  ;;  %3388 = vmatpush3.bf16.msra.mxu0 %v3789_v30  ;;  %v3906_v29 = vld [vmem:[%s4774_s2 + $0x1b0] sm:$0xff]  }
 0x102   : > { %3277 = vmatprep.subr.bf16.mxu1 %v3784_v33  ;;  %3389 = vmatprep.subr.bf16.mxu0 %v3807_v42  ;;  %v3855_v30 = vld [vmem:[%s4766_s9 + $0x1f8] ss:$28 sps:$4 sm:$0xff]  }
 0x103   : > { %v3861_v33 = vld [vmem:[%s4766_s9 + $0x15c] ss:$28 sps:$4 sm:$0xff]   ;;  %v3878_v42 = vld [vmem:[%s4766_s9 + $0x14] ss:$28 sps:$4 sm:$0xff]  }
 0x104   : > { %1564 = vmatmul.mubr.bf16.gmra.mrb[4].mxu0 %v3782_v31  ;;  %1660 = vmatmul.mubr.bf16.gmra.mrb[4].mxu1 %v3783_v32  ;;  %v3856_v31 = vld [vmem:[%s4766_s9 + $0x120] ss:$28 sps:$4 sm:$0xff]   ;;  %v3859_v32 = vld [vmem:[%s4766_s9 + $0x234] ss:$28 sps:$4 sm:$0xff]  }
 0x105   : > { %3278 = vmatpush3.bf16.msra.mxu1 %v3785_v34  ;;  %1571 = vmatprep.mubr.bf16.mxu0 %v3790_v36  ;;  %v3919_v34 = vld [vmem:[%s4774_s2 + $0x1b8] sm:$0xff]  }
 0x106   : > { %3279 = vmatprep.subr.bf16.mxu1 %v3786_v35  ;;  %1667 = vmatprep.mubr.bf16.mxu1 %v3792_v37  ;;  %v3863_v35 = vld [vmem:[%s4766_s9 + $0x230] ss:$28 sps:$4 sm:$0xff]   ;;  %v3864_v36 = vld [vmem:[%s4766_s9 + $0x158] ss:$28 sps:$4 sm:$0xff]  }
 0x107   : > { %3390 = vmatpush3.bf16.msra.mxu0 %v3809_v45  ;;  %v3868_v37 = vld [vmem:[%s4766_s9 + $0x26c] ss:$28 sps:$4 sm:$0xff]   ;;  %v3881_v45 = vld [vmem:[%s4766_s9 + $0x204] ss:$28 sps:$4 sm:$0xff]  }
 0x108   : > { %3391 = vmatprep.subr.bf16.mxu0 %v3818_v52  ;;  %v3892_v52 = vld [vmem:[%s4766_s9 + $0x80] ss:$28 sps:$4 sm:$0xff]  }
 0x109   : > { %3280 = vmatpush3.bf16.msra.mxu1 %v3788_v38  ;;  %v3870_v38 = vld [vmem:[%s4766_s9 + $0x194] ss:$28 sps:$4 sm:$0xff]  }
 0x10a   : > { %3281 = vmatprep.subr.bf16.mxu1 %v3796_v39  ;;  %v3872_v39 = vld [vmem:[%s4766_s9 + $0x268] ss:$28 sps:$4 sm:$0xff]  }
 0x10b   : > { %3392 = vmatpush3.bf16.msra.mxu0 %v3820_v54  ;;  %v3896_v54 = vld [vmem:[%s4766_s9 + $0xbc] ss:$28 sps:$4 sm:$0xff]  }
 0x10c   : > { %1572 = vmatmul.mubr.bf16.gmra.mrb[8].mxu0 %v3794_v40  ;;  %1668 = vmatmul.mubr.bf16.gmra.mrb[8].mxu1 %v3795_v41  ;;  %v3873_v40 = vld [vmem:[%s4766_s9 + $0x190] ss:$28 sps:$4 sm:$0xff]  }
 0x10d   : > { %3282 = vmatpush3.bf16.msra.mxu1 %v3797_v43  ;;  %1579 = vmatprep.mubr.bf16.mxu0 %v3800_v46  ;;  %v3874_v41 = vld [vmem:[%s4766_s9 + $0x1cc] ss:$28 sps:$4 sm:$0xff]  }
 0x10e   : > { %3283 = vmatprep.subr.bf16.mxu1 %v3798_v44  ;;  %1675 = vmatprep.mubr.bf16.mxu1 %v3802_v47  ;;  %v3876_v43 = vld [vmem:[%s4766_s9 + $0x10] ss:$28 sps:$4 sm:$0xff]   ;;  %v3879_v44 = vld [vmem:[%s4766_s9 + $0x1c8] ss:$28 sps:$4 sm:$0xff]   ;;  %v3885_v47 = vld [vmem:[%s4766_s9 + $0x200] ss:$28 sps:$4 sm:$0xff]  }
 0x10f   : > { %3393 = vmatprep.subr.bf16.mxu0 %v3833_v61  ;;  %v3883_v46 = vld [vmem:[%s4766_s9 + $0x4c] ss:$28 sps:$4 sm:$0xff]   ;;  %v3907_v61 = vld [vmem:[%s4766_s9 + $0x2e4] ss:$28 sps:$4 sm:$0xff]  }
 0x110   : > { %3394 = vmatpush3.bf16.msra.mxu0 %v3834_v62  ;;  %v3909_v62 = vld [vmem:[%s4766_s9 + $0x12c] ss:$28 sps:$4 sm:$0xff]  }
 0x111   : > { %3284 = vmatpush3.bf16.msra.mxu1 %v3799_v48  ;;  %3395 = vmatprep.subr.bf16.mxu0 %v3842_v3  ;;  %v3886_v48 = vld [vmem:[%s4766_s9 + $0x48] ss:$28 sps:$4 sm:$0xff]   ;;  %v3917_v3 = vld [vmem:[%s4766_s9 + $0x318] ss:$28 sps:$4 sm:$0xff]  }
 0x112   : > { %3285 = vmatprep.subr.bf16.mxu1 %v3806_v49  ;;  %v3887_v49 = vld [vmem:[%s4766_s9 + $0x23c] ss:$28 sps:$4 sm:$0xff]  }
 0x114   : > { %1580 = vmatmul.mubr.bf16.gmra.mrb[12].mxu0 %v3804_v50  ;;  %1676 = vmatmul.mubr.bf16.gmra.mrb[12].mxu1 %v3805_v51  ;;  %v3889_v50 = vld [vmem:[%s4766_s9 + $0x84] ss:$28 sps:$4 sm:$0xff]   ;;  %v3891_v51 = vld [vmem:[%s4766_s9 + $0x238] ss:$28 sps:$4 sm:$0xff]  }
 0x115   : > { %3286 = vmatpush3.bf16.msra.mxu1 %v3808_v53  ;;  %1587 = vmatprep.mubr.bf16.mxu0 %v3812_v55  ;;  %v3894_v53 = vld [vmem:[%s4766_s9 + $0x274] ss:$28 sps:$4 sm:$0xff]  }
 0x116   : > { %3287 = vmatprep.subr.bf16.mxu1 %v3810_v56  ;;  %1716 = vmatprep.mubr.bf16.mxu1 %v3816_v57  ;;  %v3898_v55 = vld [vmem:[%s4766_s9 + $0x270] ss:$28 sps:$4 sm:$0xff]   ;;  %v3899_v56 = vld [vmem:[%s4766_s9 + $0xb8] ss:$28 sps:$4 sm:$0xff]  }
 0x117   : > { %3396 = vmatpush3.bf16.msra.mxu0 %v3843_v4  ;;  %v3900_v57 = vld [vmem:[%s4766_s9 + $0x2ac] ss:$28 sps:$4 sm:$0xff]   ;;  %v3918_v4 = vld [vmem:[%s4766_s9 + $0x160] ss:$28 sps:$4 sm:$0xff]  }
 0x118   : > { %3397 = vmatprep.subr.bf16.mxu0 %v3857_v10  ;;  %v3928_v10 = vld [vmem:[%s4766_s9 + $0x18] ss:$28 sps:$4 sm:$0xff]  }
 0x119   : > { %3288 = vmatpush3.bf16.msra.mxu1 %v3811_v58  ;;  %v3902_v58 = vld [vmem:[%s4766_s9 + $0xf4] ss:$28 sps:$4 sm:$0xff]  }
 0x11a   : > { %3521 = vmatprep.subr.bf16.mxu1 %v3819_v59 }
 0x11b   : > { %3398 = vmatpush3.bf16.msra.mxu0 %v3858_v11  ;;  %v3929_v11 = vld [vmem:[%s4766_s9 + $0x1d0] ss:$28 sps:$4 sm:$0xff]  }
 0x11c   : > { %1588 = vmatmul.mubr.bf16.gmra.mrb[16].mxu0 %v3817_v63  ;;  %1717 = vmatmul.mubr.bf16.vlgmr.msra.gmra.mrb[16].mxu1 %v3814_v60  ;;  %v3905_v60 = vld [vmem:[%s4766_s9 + $0xf0] ss:$28 sps:$4 sm:$0xff]   ;;  %v3911_v63 = vld [vmem:[%s4766_s9 + $0x2e0] ss:$28 sps:$4 sm:$0xff]  }
 0x11d   : > { %3522 = vmatpush3.bf16.msra.mxu1 %v3819_v59  ;;  %1595 = vmatprep.mubr.bf16.mxu0 %v3821_v0  ;;  %v3904_v59 = vld [vmem:[%s4766_s9 + $0x2a8] ss:$28 sps:$4 sm:$0xff]  }
 0x11e   : > { %1724 = vmatprep.mubr.bf16.mxu1 %v3823_v1  ;;  %3523 = vmatprep.subr.bf16.mxu1 %v3835_v2  ;;  %v3912_v0 = vld [vmem:[%s4766_s9 + $0x128] ss:$28 sps:$4 sm:$0xff]   ;;  %v3913_v1 = vld [vmem:[%s4766_s9 + $0x31c] ss:$28 sps:$4 sm:$0xff]  }
 0x11f   : > { %3399 = vmatprep.subr.bf16.mxu0 %v3865_v16  ;;  %v3935_v16 = vld [vmem:[%s4766_s9 + $0xc0] ss:$28 sps:$4 sm:$0xff]  }
 0x120   : > { %3400 = vmatpush3.bf16.msra.mxu0 %v3867_v18  ;;  %v3938_v18 = vld [vmem:[%s4766_s9 + $0xf8] ss:$28 sps:$4 sm:$0xff]  }
 0x121   : > { %3524 = vmatpush3.bf16.msra.mxu1 %v3835_v2  ;;  %v3915_v2 = vld [vmem:[%s4766_s9 + $0x164] ss:$28 sps:$4 sm:$0xff]  }
 0x122   : > { %3525 = vmatprep.subr.bf16.mxu1 %v3850_v8 }
 0x124   : > { %1596 = vmatmul.mubr.bf16.gmra.mrb[20].mxu0 %v3825_v5  ;;  %1725 = vmatmul.mubr.bf16.gmra.mrb[20].mxu1 %v3826_v6  ;;  %v3920_v5 = vld [vmem:[%s4766_s9 + $0x354] ss:$28 sps:$4 sm:$0xff]   ;;  %v3922_v6 = vld [vmem:[%s4766_s9 + $0x19c] ss:$28 sps:$4 sm:$0xff]  }
 0x125   : > { %1603 = vmatprep.mubr.bf16.mxu0 %v3827_v7  ;;  %1732 = vmatprep.mubr.bf16.mxu1 %v3829_v9  ;;  %v3924_v7 = vld [vmem:[%s4766_s9 + $0x350] ss:$28 sps:$4 sm:$0xff]  }
 0x126   : > { %3526 = vmatpush3.bf16.msra.mxu1 %v3850_v8  ;;  %v3925_v8 = vld [vmem:[%s4766_s9 + $0x198] ss:$28 sps:$4 sm:$0xff]  }
 0x127   : > { %3527 = vmatprep.subr.bf16.mxu1 %v3866_v17  ;;  %v3926_v9 = vld [vmem:[%s4766_s9 + $0x1d4] ss:$28 sps:$4 sm:$0xff]  }
 0x12a   : > { %3528 = vmatpush3.bf16.msra.mxu1 %v3866_v17  ;;  %v3936_v17 = vld [vmem:[%s4766_s9 + $0x244] ss:$28 sps:$4 sm:$0xff]  }
 0x12b   : > { %3529 = vmatprep.subr.bf16.mxu1 %v3880_v23 }
 0x12c   : > { %1604 = vmatmul.mubr.bf16.gmra.mrb[24].mxu0 %v3831_v12  ;;  %1733 = vmatmul.mubr.bf16.gmra.mrb[24].mxu1 %v3832_v13  ;;  %v3930_v12 = vld [vmem:[%s4766_s9 + $0x50] ss:$28 sps:$4 sm:$0xff]  }
 0x12d   : > { %1611 = vmatprep.mubr.bf16.mxu0 %v3836_v14  ;;  %1740 = vmatprep.mubr.bf16.mxu1 %v3838_v15  ;;  %v3931_v13 = vld [vmem:[%s4766_s9 + $0x20c] ss:$28 sps:$4 sm:$0xff]  }
 0x12e   : > { %3530 = vmatpush3.bf16.msra.mxu1 %v3880_v23  ;;  %v3933_v14 = vld [vmem:[%s4766_s9 + $0x88] ss:$28 sps:$4 sm:$0xff]   ;;  %v3944_v23 = vld [vmem:[%s4766_s9 + $0x278] ss:$28 sps:$4 sm:$0xff]  }
 0x12f   : > { %3531 = vmatprep.subr.bf16.mxu1 %v3893_v26  ;;  %v3934_v15 = vld [vmem:[%s4766_s9 + $0x208] ss:$28 sps:$4 sm:$0xff]  }
 0x132   : > { %3532 = vmatpush3.bf16.msra.mxu1 %v3893_v26  ;;  %v3948_v26 = vld [vmem:[%s4766_s9 + $0x1d8] ss:$28 sps:$4 sm:$0xff]  }
 0x133   : > { %3533 = vmatprep.subr.bf16.mxu1 %v3906_v29 }
 0x134   : > { %1612 = vmatmul.mubr.bf16.gmra.mrb[28].mxu0 %v3840_v19  ;;  %1741 = vmatmul.mubr.bf16.gmra.mrb[28].mxu1 %v3841_v20  ;;  %v3939_v19 = vld [vmem:[%s4766_s9 + $0x240] ss:$28 sps:$4 sm:$0xff]   ;;  %v3940_v20 = vld [vmem:[%s4766_s9 + $0x130] ss:$28 sps:$4 sm:$0xff]  }
 0x135   : > { %1619 = vmatprep.mubr.bf16.mxu0 %v3844_v21  ;;  %1748 = vmatprep.mubr.bf16.mxu1 %v3846_v22  ;;  %v3941_v21 = vld [vmem:[%s4766_s9 + $0x27c] ss:$28 sps:$4 sm:$0xff]   ;;  %v3943_v22 = vld [vmem:[%s4766_s9 + $0x168] ss:$28 sps:$4 sm:$0xff]  }
 0x136   : > { %3534 = vmatpush3.bf16.msra.mxu1 %v3906_v29  ;;  %v3951_v29 = vld [vmem:[%s4766_s9 + $0x2ec] ss:$28 sps:$4 sm:$0xff]  }
 0x137   : > { %3535 = vmatprep.subr.bf16.mxu1 %v3919_v34 }
 0x13a   : > { %3536 = vmatpush3.bf16.msra.mxu1 %v3919_v34  ;;  %v3958_v34 = vld [vmem:[%s4766_s9 + $0x2b8] ss:$28 sps:$4 sm:$0xff]  }
 0x13c   : > { %1620 = vmatmul.mubr.bf16.gmra.mrb[32].mxu0 %v3848_v24  ;;  %1749 = vmatmul.mubr.bf16.gmra.mrb[32].mxu1 %v3849_v25  ;;  %v3945_v24 = vld [vmem:[%s4766_s9 + $0x1a0] ss:$28 sps:$4 sm:$0xff]   ;;  %v3946_v25 = vld [vmem:[%s4766_s9 + $0x2b4] ss:$28 sps:$4 sm:$0xff]  }
 0x13d   : > { %1627 = vmatprep.mubr.bf16.mxu0 %v3851_v27  ;;  %1756 = vmatprep.mubr.bf16.mxu1 %v3853_v28  ;;  %v3949_v27 = vld [vmem:[%s4766_s9 + $0x2b0] ss:$28 sps:$4 sm:$0xff]  }
 0x13e   : > { %v3950_v28 = vld [vmem:[%s4766_s9 + $0x210] ss:$28 sps:$4 sm:$0xff]  }
 0x144   : > { %1628 = vmatmul.mubr.bf16.gmra.mrb[36].mxu0 %v3855_v30  ;;  %1757 = vmatmul.mubr.bf16.gmra.mrb[36].mxu1 %v3856_v31  ;;  %v3953_v30 = vld [vmem:[%s4766_s9 + $0x248] ss:$28 sps:$4 sm:$0xff]  }
 0x145   : > { %1635 = vmatprep.mubr.bf16.mxu0 %v3859_v32  ;;  %1764 = vmatprep.mubr.bf16.mxu1 %v3861_v33  ;;  %v3954_v31 = vld [vmem:[%s4766_s9 + $0x2e8] ss:$28 sps:$4 sm:$0xff]   ;;  %v3955_v32 = vld [vmem:[%s4766_s9 + $0x280] ss:$28 sps:$4 sm:$0xff]  }
 0x146   : > { %v3956_v33 = vld [vmem:[%s4766_s9 + $0x324] ss:$28 sps:$4 sm:$0xff]  }
 0x14c   : > { %1636 = vmatmul.mubr.bf16.gmra.mrb[40].mxu0 %v3863_v35  ;;  %1765 = vmatmul.mubr.bf16.gmra.mrb[40].mxu1 %v3864_v36  ;;  %v3959_v35 = vld [vmem:[%s4766_s9 + $0x320] ss:$28 sps:$4 sm:$0xff]   ;;  %v3960_v36 = vld [vmem:[%s4766_s9 + $0x2f0] ss:$28 sps:$4 sm:$0xff]  }
 0x14d   : > { %1643 = vmatprep.mubr.bf16.mxu0 %v3868_v37  ;;  %1772 = vmatprep.mubr.bf16.mxu1 %v3870_v38  ;;  %v3961_v37 = vld [vmem:[%s4766_s9 + $0x35c] ss:$28 sps:$4 sm:$0xff]   ;;  %v3963_v38 = vld [vmem:[%s4766_s9 + $0x328] ss:$28 sps:$4 sm:$0xff]  }
 0x154   : > { %1644 = vmatmul.mubr.bf16.gmra.mrb[44].mxu0 %v3872_v39  ;;  %1773 = vmatmul.mubr.bf16.gmra.mrb[44].mxu1 %v3873_v40 }
 0x155   : > { %1780 = vmatprep.mubr.bf16.mxu1 %v3874_v41  ;;  %1877 = vmatprep.mubr.bf16.mxu0 %v3878_v42 }
 0x15c   : > { %1781 = vmatmul.mubr.bf16.gmra.mrb[48].mxu1 %v3879_v44  ;;  %1878 = vmatmul.mubr.bf16.vlgmr.msra.gmra.mrb[48].mxu0 %v3876_v43  ;;  %v3964_v43 = vld [vmem:[%s4766_s9 + $0x358] ss:$28 sps:$4 sm:$0xff]   ;;  %v3965_v44 = vld [vmem:[%s4766_s9 + $0x360] ss:$28 sps:$4 sm:$0xff]  }
 0x15d   : > { %1788 = vmatprep.mubr.bf16.mxu1 %v3881_v45  ;;  %1885 = vmatprep.mubr.bf16.mxu0 %v3883_v46 }
 0x164   : > { %1789 = vmatmul.mubr.bf16.gmra.mrb[52].mxu1 %v3885_v47  ;;  %1886 = vmatmul.mubr.bf16.gmra.mrb[52].mxu0 %v3886_v48 }
 0x165   : > { %1796 = vmatprep.mubr.bf16.mxu1 %v3887_v49  ;;  %1893 = vmatprep.mubr.bf16.mxu0 %v3889_v50 }
 0x16c   : > { %1797 = vmatmul.mubr.bf16.gmra.mrb[56].mxu1 %v3891_v51  ;;  %1894 = vmatmul.mubr.bf16.gmra.mrb[56].mxu0 %v3892_v52 }
 0x16d   : > { %1804 = vmatprep.mubr.bf16.mxu1 %v3894_v53  ;;  %1901 = vmatprep.mubr.bf16.mxu0 %v3896_v54 }
 0x174   : > { %1805 = vmatmul.mubr.bf16.gmra.mrb[60].mxu1 %v3898_v55  ;;  %1902 = vmatmul.mubr.bf16.gmra.mrb[60].mxu0 %v3899_v56 }
 0x175   : > { %1812 = vmatprep.mubr.bf16.mxu1 %v3900_v57  ;;  %1909 = vmatprep.mubr.bf16.mxu0 %v3902_v58 }
 0x17c   : > { %1813 = vmatmul.mubr.bf16.gmra.mrb[64].mxu1 %v3904_v59  ;;  %1910 = vmatmul.mubr.bf16.gmra.mrb[64].mxu0 %v3905_v60 }
 0x17d   : > { %1820 = vmatprep.mubr.bf16.mxu1 %v3907_v61  ;;  %1917 = vmatprep.mubr.bf16.mxu0 %v3909_v62 }
 0x184   : > { %1821 = vmatmul.mubr.bf16.gmra.mrb[68].mxu1 %v3911_v63  ;;  %1918 = vmatmul.mubr.bf16.gmra.mrb[68].mxu0 %v3912_v0 }
 0x185   : > { %1828 = vmatprep.mubr.bf16.mxu1 %v3913_v1  ;;  %1925 = vmatprep.mubr.bf16.mxu0 %v3915_v2 }
 0x18c   : > { %1829 = vmatmul.mubr.bf16.gmra.mrb[72].mxu1 %v3917_v3  ;;  %1926 = vmatmul.mubr.bf16.gmra.mrb[72].mxu0 %v3918_v4 }
 0x18d   : > { %1836 = vmatprep.mubr.bf16.mxu1 %v3920_v5  ;;  %1933 = vmatprep.mubr.bf16.mxu0 %v3922_v6 }
 0x194   : > { %1837 = vmatmul.mubr.bf16.gmra.mrb[76].mxu1 %v3924_v7  ;;  %1934 = vmatmul.mubr.bf16.gmra.mrb[76].mxu0 %v3925_v8 }
 0x195   : > { %1941 = vmatprep.mubr.bf16.mxu0 %v3926_v9  ;;  %3537 = vmatprep.mubr.bf16.mxu1 %v3928_v10 }
 0x19c   : > { %1942 = vmatmul.mubr.bf16.gmra.mrb[80].mxu0 %v3929_v11  ;;  %3538 = vmatmul.mubr.bf16.vlgmr.msra.gmra.mrb[80].mxu1 %v3930_v12 }
 0x19d   : > { %1949 = vmatprep.mubr.bf16.mxu0 %v3931_v13  ;;  %3541 = vmatprep.mubr.bf16.mxu1 %v3933_v14 }
 0x1a4   : > { %1950 = vmatmul.mubr.bf16.gmra.mrb[84].mxu0 %v3934_v15  ;;  %3542 = vmatmul.mubr.bf16.gmra.mrb[84].mxu1 %v3935_v16 }
 0x1a5   : > { %1957 = vmatprep.mubr.bf16.mxu0 %v3936_v17  ;;  %3545 = vmatprep.mubr.bf16.mxu1 %v3938_v18 }
 0x1ac   : > { %1958 = vmatmul.mubr.bf16.gmra.mrb[88].mxu0 %v3939_v19  ;;  %3546 = vmatmul.mubr.bf16.gmra.mrb[88].mxu1 %v3940_v20 }
 0x1ad   : > { %1965 = vmatprep.mubr.bf16.mxu0 %v3941_v21  ;;  %3549 = vmatprep.mubr.bf16.mxu1 %v3943_v22 }
 0x1b4   : > { %1966 = vmatmul.mubr.bf16.gmra.mrb[92].mxu0 %v3944_v23  ;;  %3550 = vmatmul.mubr.bf16.gmra.mrb[92].mxu1 %v3945_v24 }
 0x1b5   : > { %1973 = vmatprep.mubr.bf16.mxu0 %v3946_v25  ;;  %3553 = vmatprep.mubr.bf16.mxu1 %v3948_v26 }
 0x1bc   : > { %1974 = vmatmul.mubr.bf16.gmra.mrb[96].mxu0 %v3949_v27  ;;  %3554 = vmatmul.mubr.bf16.gmra.mrb[96].mxu1 %v3950_v28 }
 0x1bd   : > { %1981 = vmatprep.mubr.bf16.mxu0 %v3951_v29  ;;  %3557 = vmatprep.mubr.bf16.mxu1 %v3953_v30 }
 0x1c4   : > { %1982 = vmatmul.mubr.bf16.gmra.mrb[100].mxu0 %v3954_v31  ;;  %3558 = vmatmul.mubr.bf16.gmra.mrb[100].mxu1 %v3955_v32 }
 0x1c5   : > { %1989 = vmatprep.mubr.bf16.mxu0 %v3956_v33  ;;  %3561 = vmatprep.mubr.bf16.mxu1 %v3958_v34 }
 0x1cc   : > { %1990 = vmatmul.mubr.bf16.gmra.mrb[104].mxu0 %v3959_v35  ;;  %3562 = vmatmul.mubr.bf16.gmra.mrb[104].mxu1 %v3960_v36 }
 0x1cd   : > { %1997 = vmatprep.mubr.bf16.mxu0 %v3961_v37  ;;  %3565 = vmatprep.mubr.bf16.mxu1 %v3963_v38 }
 0x1cf   : > { %v3177_v39 = vpop.f32.mrb[0].mxu0  ;;  %v3249_v40 = vpop.f32.mrb[0].mxu1 }
 0x1d0   : > { %v3178_v41 = vpop.f32.mrb[1].mxu0  ;;  %v3250_v42 = vpop.f32.mrb[1].mxu1 }
 0x1d1   : > { %v3179_v45 = vadd.f32 %v3178_v41, %v3177_v39  ;;  %v3180_v46 = vpop.f32.mrb[2].mxu0  ;;  %v4962_v47 = vadd.f32 %v3250_v42, %v3249_v40  ;;  %v3252_v48 = vpop.f32.mrb[2].mxu1 }
 0x1d2   : > { %v3181_v49 = vpop.f32.mrb[3].mxu0  ;;  %v3253_v50 = vpop.f32.mrb[3].mxu1 }
 0x1d3   : > { %v3182_v51 = vadd.f32 %v3181_v49, %v3180_v46  ;;  %v4964_v52 = vadd.f32 %v3253_v50, %v3252_v48 }
 0x1d4   : > { %1998 = vmatmul.mubr.bf16.gmra.mrb[108].mxu0 %v3964_v43  ;;  %3566 = vmatmul.mubr.bf16.gmra.mrb[108].mxu1 %v3965_v44 }
 0x1d7   : > { %v3183_v53 = vpop.f32.mrb[4].mxu0  ;;  %v3255_v54 = vpop.f32.mrb[4].mxu1 }
 0x1d8   : > { %v3184_v55 = vpop.f32.mrb[5].mxu0  ;;  %v3256_v56 = vpop.f32.mrb[5].mxu1 }
 0x1d9   : > { %v3185_v57 = vadd.f32 %v3184_v55, %v3183_v53  ;;  %v3186_v58 = vpop.f32.mrb[6].mxu0  ;;  %v4966_v59 = vadd.f32 %v3256_v56, %v3255_v54  ;;  %v3258_v60 = vpop.f32.mrb[6].mxu1 }
 0x1da   : > { %v3187_v61 = vpop.f32.mrb[7].mxu0  ;;  %v3259_v62 = vpop.f32.mrb[7].mxu1 }
 0x1db   : > { %v3188_v63 = vadd.f32 %v3187_v61, %v3186_v58  ;;  %v4968_v0 = vadd.f32 %v3259_v62, %v3258_v60 }
 0x1df   : > { %v3189_v1 = vpop.f32.mrb[8].mxu0  ;;  %v3261_v2 = vpop.f32.mrb[8].mxu1 }
 0x1e0   : > { %v3190_v3 = vpop.f32.mrb[9].mxu0  ;;  %v3262_v4 = vpop.f32.mrb[9].mxu1 }
 0x1e1   : > { %v3191_v5 = vadd.f32 %v3190_v3, %v3189_v1  ;;  %v3192_v6 = vpop.f32.mrb[10].mxu0  ;;  %v4970_v7 = vadd.f32 %v3262_v4, %v3261_v2  ;;  %v3264_v8 = vpop.f32.mrb[10].mxu1 }
 0x1e2   : > { %v3193_v9 = vpop.f32.mrb[11].mxu0  ;;  %v3265_v10 = vpop.f32.mrb[11].mxu1 }
 0x1e3   : > { %v3194_v11 = vadd.f32 %v3193_v9, %v3192_v6  ;;  %v4972_v12 = vadd.f32 %v3265_v10, %v3264_v8 }
 0x1e7   : > { %v3195_v13 = vpop.f32.mrb[12].mxu0  ;;  %v3267_v14 = vpop.f32.mrb[12].mxu1 }
 0x1e8   : > { %v3196_v15 = vpop.f32.mrb[13].mxu0  ;;  %v3268_v16 = vpop.f32.mrb[13].mxu1 }
 0x1e9   : > { %v3197_v17 = vadd.f32 %v3196_v15, %v3195_v13  ;;  %v3198_v18 = vpop.f32.mrb[14].mxu0  ;;  %v4974_v19 = vadd.f32 %v3268_v16, %v3267_v14  ;;  %v3270_v20 = vpop.f32.mrb[14].mxu1 }
 0x1ea   : > { %v3199_v21 = vpop.f32.mrb[15].mxu0  ;;  %v3271_v22 = vpop.f32.mrb[15].mxu1 }
 0x1eb   : > { %v3200_v23 = vadd.f32 %v3199_v21, %v3198_v18  ;;  %v4976_v24 = vadd.f32 %v3271_v22, %v3270_v20 }
 0x1ef   : > { %v3201_v25 = vpop.f32.mrb[16].mxu0  ;;  %v3289_v26 = vpop.f32.mrb[16].mxu1 }
 0x1f0   : > { %v3202_v27 = vpop.f32.mrb[17].mxu0  ;;  %v3290_v28 = vpop.f32.mrb[17].mxu1 }
 0x1f1   : > { %v3203_v29 = vadd.f32 %v3202_v27, %v3201_v25  ;;  %v3291_v30 = vadd.f32 %v3290_v28, %v3289_v26  ;;  %v3204_v31 = vpop.f32.mrb[18].mxu0  ;;  %v3292_v32 = vpop.f32.mrb[18].mxu1 }
 0x1f2   : > { %v3205_v33 = vpop.f32.mrb[19].mxu0  ;;  %v3293_v34 = vpop.f32.mrb[19].mxu1 }
 0x1f3   : > { %v4978_v35 = vadd.f32 %v3291_v30, %v3179_v45  ;;  %v3206_v36 = vadd.f32 %v3205_v33, %v3204_v31  ;;  %v3294_v37 = vadd.f32 %v3293_v34, %v3292_v32 }
 0x1f5   : > { %v4980_v38 = vadd.f32 %v3294_v37, %v3182_v51 }
 0x1f7   : > { %v3207_v39 = vpop.f32.mrb[20].mxu0  ;;  %v3295_v40 = vpop.f32.mrb[20].mxu1 }
 0x1f8   : > { %v3208_v41 = vpop.f32.mrb[21].mxu0  ;;  %v3296_v42 = vpop.f32.mrb[21].mxu1 }
 0x1f9   : > { %v3209_v43 = vadd.f32 %v3208_v41, %v3207_v39  ;;  %v3297_v44 = vadd.f32 %v3296_v42, %v3295_v40  ;;  %v3210_v46 = vpop.f32.mrb[22].mxu0  ;;  %v3298_v48 = vpop.f32.mrb[22].mxu1 }
 0x1fa   : > { %v3211_v49 = vpop.f32.mrb[23].mxu0  ;;  %v3299_v50 = vpop.f32.mrb[23].mxu1 }
 0x1fb   : > { %v4982_v53 = vadd.f32 %v3297_v44, %v3185_v57  ;;  %v3212_v54 = vadd.f32 %v3211_v49, %v3210_v46  ;;  %v3300_v55 = vadd.f32 %v3299_v50, %v3298_v48 }
 0x1fd   : > { %v4984_v45 = vadd.f32 %v3300_v55, %v3188_v63 }
 0x1ff   : > { %v3213_v56 = vpop.f32.mrb[24].mxu0  ;;  %v3301_v58 = vpop.f32.mrb[24].mxu1 }
 0x200   : > { %v3214_v51 = vpop.f32.mrb[25].mxu0  ;;  %v3302_v60 = vpop.f32.mrb[25].mxu1 }
 0x201   : > { %v3215_v61 = vadd.f32 %v3214_v51, %v3213_v56  ;;  %v3303_v62 = vadd.f32 %v3302_v60, %v3301_v58  ;;  %v3216_v1 = vpop.f32.mrb[26].mxu0  ;;  %v3304_v2 = vpop.f32.mrb[26].mxu1 }
 0x202   : > { %v3217_v3 = vpop.f32.mrb[27].mxu0  ;;  %v3305_v4 = vpop.f32.mrb[27].mxu1 }
 0x203   : > { %v4986_v6 = vadd.f32 %v3303_v62, %v3191_v5  ;;  %v3218_v8 = vadd.f32 %v3217_v3, %v3216_v1  ;;  %v3306_v9 = vadd.f32 %v3305_v4, %v3304_v2 }
 0x205   : > { %v4988_v57 = vadd.f32 %v3306_v9, %v3194_v11 }
 0x207   : > { %v3219_v10 = vpop.f32.mrb[28].mxu0  ;;  %v3307_v13 = vpop.f32.mrb[28].mxu1 }
 0x208   : > { %v3220_v63 = vpop.f32.mrb[29].mxu0  ;;  %v3308_v14 = vpop.f32.mrb[29].mxu1 }
 0x209   : > { %v3221_v15 = vadd.f32 %v3220_v63, %v3219_v10  ;;  %v3309_v16 = vadd.f32 %v3308_v14, %v3307_v13  ;;  %v3222_v18 = vpop.f32.mrb[30].mxu0  ;;  %v3310_v20 = vpop.f32.mrb[30].mxu1 }
 0x20a   : > { %v3223_v21 = vpop.f32.mrb[31].mxu0  ;;  %v3311_v22 = vpop.f32.mrb[31].mxu1 }
 0x20b   : > { %v4990_v25 = vadd.f32 %v3309_v16, %v3197_v17  ;;  %v3224_v26 = vadd.f32 %v3223_v21, %v3222_v18  ;;  %v3312_v27 = vadd.f32 %v3311_v22, %v3310_v20 }
 0x20d   : > { %v4992_v5 = vadd.f32 %v3312_v27, %v3200_v23 }
 0x20f   : > { %v3225_v28 = vpop.f32.mrb[32].mxu0  ;;  %v3313_v30 = vpop.f32.mrb[32].mxu1 }
 0x210   : > { %v3226_v11 = vpop.f32.mrb[33].mxu0  ;;  %v3314_v31 = vpop.f32.mrb[33].mxu1 }
 0x211   : > { %v3227_v32 = vadd.f32 %v3226_v11, %v3225_v28  ;;  %v3315_v33 = vadd.f32 %v3314_v31, %v3313_v30  ;;  %v3228_v34 = vpop.f32.mrb[34].mxu0  ;;  %v3316_v37 = vpop.f32.mrb[34].mxu1 }
 0x212   : > { %v3229_v39 = vpop.f32.mrb[35].mxu0  ;;  %v3317_v40 = vpop.f32.mrb[35].mxu1 }
 0x213   : > { %v4994_v41 = vadd.f32 %v3315_v33, %v3203_v29  ;;  %v3230_v42 = vadd.f32 %v3229_v39, %v3228_v34  ;;  %v3318_v44 = vadd.f32 %v3317_v40, %v3316_v37 }
 0x215   : > { %v4996_v17 = vadd.f32 %v3318_v44, %v3206_v36 }
 0x217   : > { %v3231_v46 = vpop.f32.mrb[36].mxu0  ;;  %v3319_v48 = vpop.f32.mrb[36].mxu1 }
 0x218   : > { %v3232_v23 = vpop.f32.mrb[37].mxu0  ;;  %v3320_v49 = vpop.f32.mrb[37].mxu1 }
 0x219   : > { %v4998_v50 = vadd.f32 %v3232_v23, %v3231_v46  ;;  %v3321_v55 = vadd.f32 %v3320_v49, %v3319_v48  ;;  %v3234_v56 = vpop.f32.mrb[38].mxu0  ;;  %v3322_v58 = vpop.f32.mrb[38].mxu1 }
 0x21a   : > { %v3235_v51 = vpop.f32.mrb[39].mxu0  ;;  %v3323_v60 = vpop.f32.mrb[39].mxu1 }
 0x21b   : > { %v5000_v62 = vadd.f32 %v3321_v55, %v3209_v43  ;;  %v3236_v1 = vadd.f32 %v3235_v51, %v3234_v56  ;;  %v3324_v29 = vadd.f32 %v3323_v60, %v3322_v58 }
 0x21d   : > { %v5002_v2 = vadd.f32 %v3324_v29, %v3212_v54 }
 0x21f   : > { %v3237_v3 = vpop.f32.mrb[40].mxu0  ;;  %v3325_v36 = vpop.f32.mrb[40].mxu1 }
 0x220   : > { %v3238_v4 = vpop.f32.mrb[41].mxu0  ;;  %v3326_v9 = vpop.f32.mrb[41].mxu1 }
 0x221   : > { %v5004_v10 = vadd.f32 %v3238_v4, %v3237_v3  ;;  %v3327_v13 = vadd.f32 %v3326_v9, %v3325_v36  ;;  %v3240_v63 = vpop.f32.mrb[42].mxu0  ;;  %v3328_v14 = vpop.f32.mrb[42].mxu1 }
 0x222   : > { %v3241_v16 = vpop.f32.mrb[43].mxu0  ;;  %v3329_v18 = vpop.f32.mrb[43].mxu1 }
 0x223   : > { %v5006_v20 = vadd.f32 %v3327_v13, %v3215_v61  ;;  %v5008_v21 = vadd.f32 %v3241_v16, %v3240_v63  ;;  %v3330_v43 = vadd.f32 %v3329_v18, %v3328_v14 }
 0x225   : > { %v5010_v22 = vadd.f32 %v3330_v43, %v3218_v8 }
 0x227   : > { %v3243_v54 = vpop.f32.mrb[44].mxu0  ;;  %v3331_v27 = vpop.f32.mrb[44].mxu1 }
 0x228   : > { %v3244_v28 = vpop.f32.mrb[45].mxu0  ;;  %v3332_v30 = vpop.f32.mrb[45].mxu1 }
 0x229   : > { %v5012_v11 = vadd.f32 %v3244_v28, %v3243_v54  ;;  %v3333_v31 = vadd.f32 %v3332_v30, %v3331_v27  ;;  %v3246_v33 = vpop.f32.mrb[46].mxu0  ;;  %v3334_v34 = vpop.f32.mrb[46].mxu1 }
 0x22a   : > { %v3247_v37 = vpop.f32.mrb[47].mxu0  ;;  %v3335_v39 = vpop.f32.mrb[47].mxu1 }
 0x22b   : > { %v5014_v40 = vadd.f32 %v3333_v31, %v3221_v15  ;;  %v5016_v61 = vadd.f32 %v3247_v37, %v3246_v33  ;;  %v3336_v44 = vadd.f32 %v3335_v39, %v3334_v34 }
 0x22d   : > { %v5018_v46 = vadd.f32 %v3336_v44, %v3224_v26 }
 0x22f   : > { %v3337_v8 = vpop.f32.mrb[48].mxu1  ;;  %v3401_v48 = vpop.f32.mrb[48].mxu0 }
 0x230   : > { %v3338_v23 = vpop.f32.mrb[49].mxu1  ;;  %v3402_v49 = vpop.f32.mrb[49].mxu0 }
 0x231   : > { %v3339_v55 = vadd.f32 %v3338_v23, %v3337_v8  ;;  %v3403_v56 = vadd.f32 %v3402_v49, %v3401_v48  ;;  %v3340_v58 = vpop.f32.mrb[50].mxu1  ;;  %v3404_v51 = vpop.f32.mrb[50].mxu0 }
 0x232   : > { %v3341_v60 = vpop.f32.mrb[51].mxu1  ;;  %v3405_v29 = vpop.f32.mrb[51].mxu0 }
 0x233   : > { %v5020_v3 = vadd.f32 %v3339_v55, %v3227_v32  ;;  %v3342_v36 = vadd.f32 %v3341_v60, %v3340_v58  ;;  %v3406_v15 = vadd.f32 %v3405_v29, %v3404_v51  ;;  %v5023_v4 = vadd.f32 %v3403_v56, %v4978_v35 }
 0x235   : > { %v5025_v9 = vadd.f32 %v3342_v36, %v3230_v42  ;;  %v5028_v26 = vadd.f32 %v3406_v15, %v4980_v38 }
 0x237   : > { %v3343_v13 = vpop.f32.mrb[52].mxu1  ;;  %v3407_v63 = vpop.f32.mrb[52].mxu0 }
 0x238   : > { %v3344_v14 = vpop.f32.mrb[53].mxu1  ;;  %v3408_v16 = vpop.f32.mrb[53].mxu0 }
 0x239   : > { %v3345_v18 = vadd.f32 %v3344_v14, %v3343_v13  ;;  %v3409_v43 = vadd.f32 %v3408_v16, %v3407_v63  ;;  %v3346_v54 = vpop.f32.mrb[54].mxu1  ;;  %v3410_v27 = vpop.f32.mrb[54].mxu0 }
 0x23a   : > { %v3347_v32 = vpop.f32.mrb[55].mxu1  ;;  %v3411_v28 = vpop.f32.mrb[55].mxu0 }
 0x23b   : > { %v5031_v30 = vadd.f32 %v3345_v18, %v4998_v50  ;;  %v3348_v35 = vadd.f32 %v3347_v32, %v3346_v54  ;;  %v3412_v31 = vadd.f32 %v3411_v28, %v3410_v27  ;;  %v5034_v42 = vadd.f32 %v3409_v43, %v4982_v53 }
 0x23d   : > { %v5036_v38 = vadd.f32 %v3348_v35, %v3236_v1  ;;  %v5039_v33 = vadd.f32 %v3412_v31, %v4984_v45 }
 0x23f   : > { %v3349_v34 = vpop.f32.mrb[56].mxu1  ;;  %v3413_v37 = vpop.f32.mrb[56].mxu0 }
 0x240   : > { %v3350_v39 = vpop.f32.mrb[57].mxu1  ;;  %v3414_v44 = vpop.f32.mrb[57].mxu0 }
 0x241   : > { %v3351_v8 = vadd.f32 %v3350_v39, %v3349_v34  ;;  %v3415_v48 = vadd.f32 %v3414_v44, %v3413_v37  ;;  %v3352_v23 = vpop.f32.mrb[58].mxu1  ;;  %v3416_v49 = vpop.f32.mrb[58].mxu0 }
 0x242   : > { %v3353_v50 = vpop.f32.mrb[59].mxu1  ;;  %v3417_v55 = vpop.f32.mrb[59].mxu0 }
 0x243   : > { %v5042_v56 = vadd.f32 %v3351_v8, %v5004_v10  ;;  %v3354_v53 = vadd.f32 %v3353_v50, %v3352_v23  ;;  %v3418_v58 = vadd.f32 %v3417_v55, %v3416_v49  ;;  %v5045_v1 = vadd.f32 %v3415_v48, %v4986_v6 }
 0x245   : > { %v5048_v45 = vadd.f32 %v3354_v53, %v5008_v21  ;;  %v5051_v51 = vadd.f32 %v3418_v58, %v4988_v57 }
 0x247   : > { %v3355_v60 = vpop.f32.mrb[60].mxu1  ;;  %v3419_v29 = vpop.f32.mrb[60].mxu0 }
 0x248   : > { %v3356_v36 = vpop.f32.mrb[61].mxu1  ;;  %v3420_v15 = vpop.f32.mrb[61].mxu0 }
 0x249   : > { %v3357_v13 = vadd.f32 %v3356_v36, %v3355_v60  ;;  %v3421_v63 = vadd.f32 %v3420_v15, %v3419_v29  ;;  %v3358_v14 = vpop.f32.mrb[62].mxu1  ;;  %v3422_v10 = vpop.f32.mrb[62].mxu0 }
 0x24a   : > { %v3359_v16 = vpop.f32.mrb[63].mxu1  ;;  %v3423_v18 = vpop.f32.mrb[63].mxu0 }
 0x24b   : > { %v5054_v43 = vadd.f32 %v3357_v13, %v5012_v11  ;;  %v3360_v6 = vadd.f32 %v3359_v16, %v3358_v14  ;;  %v3424_v54 = vadd.f32 %v3423_v18, %v3422_v10  ;;  %v5057_v21 = vadd.f32 %v3421_v63, %v4990_v25 }
 0x24d   : > { %v5060_v57 = vadd.f32 %v3360_v6, %v5016_v61  ;;  %v5063_v27 = vadd.f32 %v3424_v54, %v4992_v5 }
 0x24f   : > { %v3361_v32 = vpop.f32.mrb[64].mxu1  ;;  %v3425_v28 = vpop.f32.mrb[64].mxu0 }
 0x250   : > { %v3362_v35 = vpop.f32.mrb[65].mxu1  ;;  %v3426_v31 = vpop.f32.mrb[65].mxu0 }
 0x251   : > { %v3363_v34 = vadd.f32 %v3362_v35, %v3361_v32  ;;  %v3427_v37 = vadd.f32 %v3426_v31, %v3425_v28  ;;  %v3364_v39 = vpop.f32.mrb[66].mxu1  ;;  %v3428_v11 = vpop.f32.mrb[66].mxu0 }
 0x252   : > { %v3365_v44 = vpop.f32.mrb[67].mxu1  ;;  %v3429_v8 = vpop.f32.mrb[67].mxu0 }
 0x253   : > { %v5066_v48 = vadd.f32 %v3363_v34, %v4962_v47  ;;  %v3366_v25 = vadd.f32 %v3365_v44, %v3364_v39  ;;  %v3430_v23 = vadd.f32 %v3429_v8, %v3428_v11  ;;  %v5069_v61 = vadd.f32 %v3427_v37, %v4994_v41 }
 0x255   : > { %v5072_v5 = vadd.f32 %v3366_v25, %v4964_v52  ;;  %v5075_v49 = vadd.f32 %v3430_v23, %v4996_v17 }
 0x257   : > { %v3367_v50 = vpop.f32.mrb[68].mxu1  ;;  %v3431_v55 = vpop.f32.mrb[68].mxu0 }
 0x258   : > { %v3368_v53 = vpop.f32.mrb[69].mxu1  ;;  %v3432_v58 = vpop.f32.mrb[69].mxu0 }
 0x259   : > { %v3369_v60 = vadd.f32 %v3368_v53, %v3367_v50  ;;  %v3433_v29 = vadd.f32 %v3432_v58, %v3431_v55  ;;  %v3370_v36 = vpop.f32.mrb[70].mxu1  ;;  %v3434_v47 = vpop.f32.mrb[70].mxu0 }
 0x25a   : > { %v3371_v15 = vpop.f32.mrb[71].mxu1  ;;  %v3435_v13 = vpop.f32.mrb[71].mxu0 }
 0x25b   : > { %v5078_v63 = vadd.f32 %v3369_v60, %v4966_v59  ;;  %v3372_v41 = vadd.f32 %v3371_v15, %v3370_v36  ;;  %v3436_v14 = vadd.f32 %v3435_v13, %v3434_v47  ;;  %v5081_v52 = vadd.f32 %v3433_v29, %v5000_v62  ;;  %v341_v13 = vld [vmem:[#allocation2 + $0x10] sm:$0xff] }
 0x25d   : > { %v5084_v17 = vadd.f32 %v3372_v41, %v4968_v0  ;;  %v5087_v10 = vadd.f32 %v3436_v14, %v5002_v2 }
 0x25f   : > { %v3373_v16 = vpop.f32.mrb[72].mxu1  ;;  %v3437_v18 = vpop.f32.mrb[72].mxu0 }
 0x260   : > { %v3374_v6 = vpop.f32.mrb[73].mxu1  ;;  %v3438_v54 = vpop.f32.mrb[73].mxu0 }
 0x261   : > { %v3375_v32 = vadd.f32 %v3374_v6, %v3373_v16  ;;  %v3439_v28 = vadd.f32 %v3438_v54, %v3437_v18  ;;  %v3376_v35 = vpop.f32.mrb[74].mxu1  ;;  %v3440_v59 = vpop.f32.mrb[74].mxu0  ;;  %v339_v18 = vld [vmem:[#allocation2] sm:$0xff] }
 0x262   : > { %v3377_v31 = vpop.f32.mrb[75].mxu1  ;;  %v3441_v34 = vpop.f32.mrb[75].mxu0 }
 0x263   : > { %v5090_v37 = vadd.f32 %v3375_v32, %v4970_v7  ;;  %v3378_v62 = vadd.f32 %v3377_v31, %v3376_v35  ;;  %v3442_v39 = vadd.f32 %v3441_v34, %v3440_v59  ;;  %v5093_v0 = vadd.f32 %v3439_v28, %v5006_v20 }
 0x265   : > { %v5096_v2 = vadd.f32 %v3378_v62, %v4972_v12  ;;  %v5099_v11 = vadd.f32 %v3442_v39, %v5010_v22 }
 0x267   : > { %v3379_v44 = vpop.f32.mrb[76].mxu1  ;;  %v3443_v8 = vpop.f32.mrb[76].mxu0 }
 0x268   : > { %v3380_v25 = vpop.f32.mrb[77].mxu1  ;;  %v3444_v23 = vpop.f32.mrb[77].mxu0 }
 0x269   : > { %v3381_v50 = vadd.f32 %v3380_v25, %v3379_v44  ;;  %v3445_v55 = vadd.f32 %v3444_v23, %v3443_v8  ;;  %v3382_v53 = vpop.f32.mrb[78].mxu1  ;;  %v3446_v7 = vpop.f32.mrb[78].mxu0  ;;  %v345_v25 = vld [vmem:[#allocation2 + $0x30] sm:$0xff] }
 0x26a   : > { %v3383_v58 = vpop.f32.mrb[79].mxu1  ;;  %v3447_v60 = vpop.f32.mrb[79].mxu0 }
 0x26b   : > { %v5102_v29 = vadd.f32 %v3381_v50, %v4974_v19  ;;  %v3384_v20 = vadd.f32 %v3383_v58, %v3382_v53  ;;  %v3448_v36 = vadd.f32 %v3447_v60, %v3446_v7  ;;  %v5105_v12 = vadd.f32 %v3445_v55, %v5014_v40  ;;  %v342_v40 = vld [vmem:[#allocation2 + $0x18] sm:$0xff]  ;;  %v343_v53 = vld [vmem:[#allocation2 + $0x20] sm:$0xff] }
 0x26c   : > { %v346_v60 = vld [vmem:[#allocation2 + $0x38] sm:$0xff] }
 0x26d   : > { %v5108_v22 = vadd.f32 %v3384_v20, %v4976_v24  ;;  %v5111_v47 = vadd.f32 %v3448_v36, %v5018_v46  ;;  %v340_v46 = vld [vmem:[#allocation2 + $0x8] sm:$0xff] }
 0x26f   : > { %v3449_v15 = vpop.f32.mrb[80].mxu0  ;;  %v3539_v41 = vpop.f32.mrb[80].mxu1 }
 0x270   : > { %v2049_v14 = vadd.f32 %v3539_v41, %v5034_v42  ;;  %v3450_v16 = vpop.f32.mrb[81].mxu0  ;;  %v2040_v19 = vpop.f32.mrb[81].mxu1 }
 0x271   : > { %v3451_v6 = vadd.f32 %v3450_v16, %v3449_v15  ;;  %v2041_v54 = vadd.f32 %v2040_v19, %v5023_v4  ;;  %v3452_v32 = vpop.f32.mrb[82].mxu0  ;;  %v3540_v28 = vpop.f32.mrb[82].mxu1 }
 0x272   : > { %v2169_v35 = vadd.f32 %v2049_v14, %v341_v13  ;;  %v2052_v24 = vadd.f32 %v3540_v28, %v5039_v33  ;;  %v3453_v59 = vpop.f32.mrb[83].mxu0  ;;  %v2043_v31 = vpop.f32.mrb[83].mxu1  ;;  %v344_v13 = vld [vmem:[#allocation2 + $0x28] sm:$0xff] }
 0x273   : > { %v2167_v34 = vadd.f32 %v2041_v54, %v339_v18  ;;  %v3454_v62 = vadd.f32 %v3453_v59, %v3452_v32  ;;  %v2044_v39 = vadd.f32 %v2043_v31, %v5028_v26  ;;  %v5118_v42 = vadd.f32 %v3451_v6, %v5020_v3  ;;  %v349_v54 = vld [vmem:[#allocation2 + $0x50] sm:$0xff] }
 0x274   : > { %2201 = vst [vmem:[#allocation2 + $0x10] sm:$0xff] %v2169_v35  ;;  %v2170_v44 = vadd.f32 %v2052_v24, %v342_v40  ;;  %v347_v35 = vld [vmem:[#allocation2 + $0x40] sm:$0xff] }
 0x275   : > { %2199 = vst [vmem:[#allocation2] sm:$0xff] %v2167_v34  ;;  %v2168_v4 = vadd.f32 %v2044_v39, %v340_v46  ;;  %v5121_v8 = vadd.f32 %v3454_v62, %v5025_v9  ;;  %v350_v46 = vld [vmem:[#allocation2 + $0x58] sm:$0xff]  ;;  %v348_v39 = vld [vmem:[#allocation2 + $0x48] sm:$0xff] }
 0x276   : > { %2202 = vst [vmem:[#allocation2 + $0x18] sm:$0xff] %v2170_v44 }
 0x277   : > { %2200 = vst [vmem:[#allocation2 + $0x8] sm:$0xff] %v2168_v4  ;;  %v3455_v33 = vpop.f32.mrb[84].mxu0  ;;  %v3543_v23 = vpop.f32.mrb[84].mxu1 }
 0x278   : > { %v2065_v50 = vadd.f32 %v3543_v23, %v5057_v21  ;;  %v3456_v55 = vpop.f32.mrb[85].mxu0  ;;  %v2056_v26 = vpop.f32.mrb[85].mxu1 }
 0x279   : > { %v3457_v7 = vadd.f32 %v3456_v55, %v3455_v33  ;;  %v2057_v3 = vadd.f32 %v2056_v26, %v5045_v1  ;;  %v3458_v58 = vpop.f32.mrb[86].mxu0  ;;  %v3544_v20 = vpop.f32.mrb[86].mxu1  ;;  %v353_v55 = vld [vmem:[#allocation2 + $0x70] sm:$0xff] }
 0x27a   : > { %v2173_v36 = vadd.f32 %v2065_v50, %v345_v25  ;;  %v2068_v9 = vadd.f32 %v3544_v20, %v5063_v27  ;;  %v3459_v15 = vpop.f32.mrb[87].mxu0  ;;  %v2059_v41 = vpop.f32.mrb[87].mxu1  ;;  %v354_v20 = vld [vmem:[#allocation2 + $0x78] sm:$0xff] }
 0x27b   : > { %v2171_v14 = vadd.f32 %v2057_v3, %v343_v53  ;;  %v3460_v16 = vadd.f32 %v3459_v15, %v3458_v58  ;;  %v2060_v18 = vadd.f32 %v2059_v41, %v5051_v51  ;;  %v5128_v21 = vadd.f32 %v3457_v7, %v5031_v30  ;;  %v351_v3 = vld [vmem:[#allocation2 + $0x60] sm:$0xff] }
 0x27c   : > { %2205 = vst [vmem:[#allocation2 + $0x30] sm:$0xff] %v2173_v36  ;;  %v2174_v19 = vadd.f32 %v2068_v9, %v346_v60 }
 0x27d   : > { %2203 = vst [vmem:[#allocation2 + $0x20] sm:$0xff] %v2171_v14  ;;  %v2172_v1 = vadd.f32 %v2060_v18, %v344_v13  ;;  %v5131_v6 = vadd.f32 %v3460_v16, %v5036_v38  ;;  %v352_v13 = vld [vmem:[#allocation2 + $0x68] sm:$0xff] }
 0x27e   : > { %2206 = vst [vmem:[#allocation2 + $0x38] sm:$0xff] %v2174_v19 }
 0x27f   : > { %2204 = vst [vmem:[#allocation2 + $0x28] sm:$0xff] %v2172_v1  ;;  %v3461_v27 = vpop.f32.mrb[88].mxu0  ;;  %v3547_v32 = vpop.f32.mrb[88].mxu1 }
 0x280   : > { %v2081_v40 = vadd.f32 %v3547_v32, %v5081_v52  ;;  %v3462_v28 = vpop.f32.mrb[89].mxu0  ;;  %v2072_v51 = vpop.f32.mrb[89].mxu1 }
 0x281   : > { %v3463_v24 = vadd.f32 %v3462_v28, %v3461_v27  ;;  %v2073_v30 = vadd.f32 %v2072_v51, %v5069_v61  ;;  %v3464_v59 = vpop.f32.mrb[90].mxu0  ;;  %v3548_v31 = vpop.f32.mrb[90].mxu1  ;;  %v355_v28 = vld [vmem:[#allocation2 + $0x80] sm:$0xff] }
 0x282   : > { %v2177_v34 = vadd.f32 %v2081_v40, %v349_v54  ;;  %v2084_v38 = vadd.f32 %v3548_v31, %v5087_v10  ;;  %v3465_v62 = vpop.f32.mrb[91].mxu0  ;;  %v2075_v44 = vpop.f32.mrb[91].mxu1  ;;  %v357_v54 = vld [vmem:[#allocation2 + $0x90] sm:$0xff]  ;;  %v356_v31 = vld [vmem:[#allocation2 + $0x88] sm:$0xff] }
 0x283   : > { %v2175_v4 = vadd.f32 %v2073_v30, %v347_v35  ;;  %v3466_v33 = vadd.f32 %v3465_v62, %v3464_v59  ;;  %v2076_v25 = vadd.f32 %v2075_v44, %v5075_v49  ;;  %v5138_v52 = vadd.f32 %v3463_v24, %v5042_v56  ;;  %v358_v24 = vld [vmem:[#allocation2 + $0x98] sm:$0xff] }
 0x284   : > { %2209 = vst [vmem:[#allocation2 + $0x50] sm:$0xff] %v2177_v34  ;;  %v2178_v23 = vadd.f32 %v2084_v38, %v350_v46 }
 0x285   : > { %2207 = vst [vmem:[#allocation2 + $0x40] sm:$0xff] %v2175_v4  ;;  %v2176_v61 = vadd.f32 %v2076_v25, %v348_v39  ;;  %v5141_v50 = vadd.f32 %v3466_v33, %v5048_v45  ;;  %v361_v25 = vld [vmem:[#allocation2 + $0xb0] sm:$0xff] }
 0x286   : > { %2210 = vst [vmem:[#allocation2 + $0x58] sm:$0xff] %v2178_v23 }
 0x287   : > { %2208 = vst [vmem:[#allocation2 + $0x48] sm:$0xff] %v2176_v61  ;;  %v3467_v10 = vpop.f32.mrb[92].mxu0  ;;  %v3551_v53 = vpop.f32.mrb[92].mxu1 }
 0x288   : > { %v2097_v26 = vadd.f32 %v3551_v53, %v5105_v12  ;;  %v3468_v7 = vpop.f32.mrb[93].mxu0  ;;  %v2088_v49 = vpop.f32.mrb[93].mxu1 }
 0x289   : > { %v3469_v58 = vadd.f32 %v3468_v7, %v3467_v10  ;;  %v2089_v56 = vadd.f32 %v2088_v49, %v5093_v0  ;;  %v3470_v60 = vpop.f32.mrb[94].mxu0  ;;  %v3552_v36 = vpop.f32.mrb[94].mxu1  ;;  %v359_v10 = vld [vmem:[#allocation2 + $0xa0] sm:$0xff] }
 0x28a   : > { %v2181_v9 = vadd.f32 %v2097_v26, %v353_v55  ;;  %v2100_v45 = vadd.f32 %v3552_v36, %v5111_v47  ;;  %v3471_v15 = vpop.f32.mrb[95].mxu0  ;;  %v2091_v41 = vpop.f32.mrb[95].mxu1 }
 0x28b   : > { %v2179_v14 = vadd.f32 %v2089_v56, %v351_v3  ;;  %v3472_v16 = vadd.f32 %v3471_v15, %v3470_v60  ;;  %v2092_v18 = vadd.f32 %v2091_v41, %v5099_v11  ;;  %v1968_v12 = vadd.f32 %v3469_v58, %v5054_v43  ;;  %v360_v56 = vld [vmem:[#allocation2 + $0xa8] sm:$0xff]  ;;  %v365_v41 = vld [vmem:[#allocation2 + $0xd0] sm:$0xff] }
 0x28c   : > { %2213 = vst [vmem:[#allocation2 + $0x70] sm:$0xff] %v2181_v9  ;;  %v2182_v19 = vadd.f32 %v2100_v45, %v354_v20 }
 0x28d   : > { %2211 = vst [vmem:[#allocation2 + $0x60] sm:$0xff] %v2179_v14  ;;  %v2180_v1 = vadd.f32 %v2092_v18, %v352_v13  ;;  %v1971_v0 = vadd.f32 %v3472_v16, %v5060_v57 }
 0x28e   : > { %2214 = vst [vmem:[#allocation2 + $0x78] sm:$0xff] %v2182_v19 }
 0x28f   : > { %2212 = vst [vmem:[#allocation2 + $0x68] sm:$0xff] %v2180_v1  ;;  %v3473_v27 = vpop.f32.mrb[96].mxu0  ;;  %v3555_v47 = vpop.f32.mrb[96].mxu1 }
 0x290   : > { %v2113_v32 = vadd.f32 %v3555_v47, %v5128_v21  ;;  %v3474_v40 = vpop.f32.mrb[97].mxu0  ;;  %v2104_v35 = vpop.f32.mrb[97].mxu1 }
 0x291   : > { %v3475_v51 = vadd.f32 %v3474_v40, %v3473_v27  ;;  %v2105_v11 = vadd.f32 %v2104_v35, %v5118_v42  ;;  %v3476_v43 = vpop.f32.mrb[98].mxu0  ;;  %v3556_v30 = vpop.f32.mrb[98].mxu1  ;;  %v366_v27 = vld [vmem:[#allocation2 + $0xd8] sm:$0xff]  ;;  %v364_v40 = vld [vmem:[#allocation2 + $0xc8] sm:$0xff] }
 0x292   : > { %v2185_v59 = vadd.f32 %v2113_v32, %v357_v54  ;;  %v2116_v46 = vadd.f32 %v3556_v30, %v5131_v6  ;;  %v3477_v57 = vpop.f32.mrb[99].mxu0  ;;  %v2107_v34 = vpop.f32.mrb[99].mxu1 }
 0x293   : > { %v2183_v38 = vadd.f32 %v2105_v11, %v355_v28  ;;  %v3478_v62 = vadd.f32 %v3477_v57, %v3476_v43  ;;  %v2108_v39 = vadd.f32 %v2107_v34, %v5121_v8  ;;  %v1976_v21 = vadd.f32 %v3475_v51, %v5066_v48  ;;  %v362_v48 = vld [vmem:[#allocation2 + $0xb8] sm:$0xff] }
 0x294   : > { %2217 = vst [vmem:[#allocation2 + $0x90] sm:$0xff] %v2185_v59  ;;  %v2186_v44 = vadd.f32 %v2116_v46, %v358_v24 }
 0x295   : > { %2215 = vst [vmem:[#allocation2 + $0x80] sm:$0xff] %v2183_v38  ;;  %v2184_v4 = vadd.f32 %v2108_v39, %v356_v31  ;;  %v1979_v42 = vadd.f32 %v3478_v62, %v5072_v5  ;;  %v367_v31 = vld [vmem:[#allocation2 + $0xe0] sm:$0xff] }
 0x296   : > { %2218 = vst [vmem:[#allocation2 + $0x98] sm:$0xff] %v2186_v44 }
 0x297   : > { %2216 = vst [vmem:[#allocation2 + $0x88] sm:$0xff] %v2184_v4  ;;  %v3479_v33 = vpop.f32.mrb[100].mxu0  ;;  %v3559_v6 = vpop.f32.mrb[100].mxu1  ;;  %v368_v4 = vld [vmem:[#allocation2 + $0xe8] sm:$0xff] }
 0x298   : > { %v2129_v23 = vadd.f32 %v3559_v6, %v1968_v12  ;;  %v3480_v61 = vpop.f32.mrb[101].mxu0  ;;  %v2120_v55 = vpop.f32.mrb[101].mxu1  ;;  %v363_v12 = vld [vmem:[#allocation2 + $0xc0] sm:$0xff] }
 0x299   : > { %v3481_v53 = vadd.f32 %v3480_v61, %v3479_v33  ;;  %v2121_v8 = vadd.f32 %v2120_v55, %v5138_v52  ;;  %v3482_v26 = vpop.f32.mrb[102].mxu0  ;;  %v3560_v7 = vpop.f32.mrb[102].mxu1  ;;  %v370_v55 = vld [vmem:[#allocation2 + $0xf8] sm:$0xff] }
 0x29a   : > { %v2189_v3 = vadd.f32 %v2129_v23, %v361_v25  ;;  %v2132_v49 = vadd.f32 %v3560_v7, %v1971_v0  ;;  %v3483_v58 = vpop.f32.mrb[103].mxu0  ;;  %v2123_v5 = vpop.f32.mrb[103].mxu1  ;;  %v2235_v7 = vld [vmem:[#allocation2] sm:$0xff] (!%p3119_p11) }
 0x29b   : > { %v2187_v60 = vadd.f32 %v2121_v8, %v359_v10  ;;  %v3484_v20 = vadd.f32 %v3483_v58, %v3482_v26  ;;  %v2124_v36 = vadd.f32 %v2123_v5, %v5141_v50  ;;  %v1984_v9 = vadd.f32 %v3481_v53, %v5078_v63  ;;  %v2236_v58 = vld [vmem:[#allocation2 + $0x8] sm:$0xff] (!%p3119_p11) }
 0x29c   : > { %2221 = vst [vmem:[#allocation2 + $0xb0] sm:$0xff] %v2189_v3  ;;  %v2190_v45 = vadd.f32 %v2132_v49, %v362_v48  ;;  %v5164_v48 = vld [vmem:[#allocation8] ss:$0 sm:$0xff] (!%p3119_p11)  ;;  %v2238_v49 = vld [vmem:[#allocation2 + $0x18] sm:$0xff] (!%p3119_p11) }
 0x29d   : > { %2219 = vst [vmem:[#allocation2 + $0xa0] sm:$0xff] %v2187_v60  ;;  %v2188_v15 = vadd.f32 %v2124_v36, %v360_v56  ;;  %v1987_v52 = vadd.f32 %v3484_v20, %v5084_v17  ;;  %v2240_v56 = vld [vmem:[#allocation2 + $0x28] sm:$0xff] (!%p3119_p11)  ;;  %v5173_v5 = vadd.f32 (!%p3119_p11), %v5164_v48, %v2238_v49  ;;  %v5176_v60 = vadd.f32 (!%p3119_p11), %v5164_v48, %v2236_v58  ;;  %v2239_v20 = vld [vmem:[#allocation2 + $0x20] sm:$0xff] (!%p3119_p11) }
 0x29e   : > { %2222 = vst [vmem:[#allocation2 + $0xb8] sm:$0xff] %v2190_v45  ;;  %v5183_v45 = vadd.f32 (!%p3119_p11), %v5164_v48, %v2240_v56 }
 0x29f   : > { %2220 = vst [vmem:[#allocation2 + $0xa8] sm:$0xff] %v2188_v15  ;;  %v3485_v13 = vpop.f32.mrb[104].mxu0  ;;  %v3563_v14 = vpop.f32.mrb[104].mxu1  ;;  %v2310_v15 = vmul.f32 (!%p3119_p11), %v5173_v5, %v5173_v5 }
 0x2a0   : > { %v2145_v16 = vadd.f32 %v3563_v14, %v1984_v9  ;;  %v3486_v18 = vpop.f32.mrb[105].mxu0  ;;  %v2136_v19 = vpop.f32.mrb[105].mxu1  ;;  %v2241_v14 = vld [vmem:[#allocation2 + $0x30] sm:$0xff] (!%p3119_p11) }
 0x2a1   : > { %v3487_v1 = vadd.f32 %v3486_v18, %v3485_v13  ;;  %v2137_v0 = vadd.f32 %v2136_v19, %v1976_v21  ;;  %v3488_v50 = vpop.f32.mrb[106].mxu0  ;;  %v3564_v63 = vpop.f32.mrb[106].mxu1  ;;  %v5190_v13 = vadd.f32 (!%p3119_p11), %v5164_v48, %v2239_v20  ;;  %v2312_v18 = vmul.f32 (!%p3119_p11), %v5183_v45, %v5183_v45 }
 0x2a2   : > { %v2193_v54 = vadd.f32 %v2145_v16, %v365_v41  ;;  %v2148_v47 = vadd.f32 %v3564_v63, %v1987_v52  ;;  %v3489_v32 = vpop.f32.mrb[107].mxu0  ;;  %v2139_v28 = vpop.f32.mrb[107].mxu1  ;;  %v2308_v52 = vmul.f32 (!%p3119_p11), %v5176_v60, %v5176_v60  ;;  %v2242_v41 = vld [vmem:[#allocation2 + $0x38] sm:$0xff] (!%p3119_p11)  ;;  %v5200_v19 = vadd.f32 (!%p3119_p11), %v5164_v48, %v2241_v14 }
 0x2a3   : > { %v2191_v17 = vadd.f32 %v2137_v0, %v363_v12  ;;  %v3490_v35 = vadd.f32 %v3489_v32, %v3488_v50  ;;  %v2140_v51 = vadd.f32 %v2139_v28, %v1979_v42  ;;  %v1992_v11 = vadd.f32 %v3487_v1, %v5090_v37  ;;  %v2244_v1 = vld [vmem:[#allocation2 + $0x48] sm:$0xff] (!%p3119_p11)  ;;  %v2243_v0 = vld [vmem:[#allocation2 + $0x40] sm:$0xff] (!%p3119_p11)  ;;  %v2245_v32 = vld [vmem:[#allocation2 + $0x50] sm:$0xff] (!%p3119_p11) }
 0x2a4   : > { %2225 = vst [vmem:[#allocation2 + $0xd0] sm:$0xff] %v2193_v54  ;;  %v2194_v43 = vadd.f32 %v2148_v47, %v366_v27  ;;  %v5193_v16 = vadd.f32 (!%p3119_p11), %v5164_v48, %v2242_v41  ;;  %v2311_v12 = vmul.f32 (!%p3119_p11), %v5190_v13, %v5190_v13  ;;  %v2313_v27 = vmul.f32 (!%p3119_p11), %v5200_v19, %v5200_v19  ;;  %v2246_v47 = vld [vmem:[#allocation2 + $0x58] sm:$0xff] (!%p3119_p11)  ;;  %v2257_v49 = vld [vmem:[#allocation2 + $0xb0] sm:$0xff] (!%p3119_p11) }
 0x2a5   : > { %2223 = vst [vmem:[#allocation2 + $0xc0] sm:$0xff] %v2191_v17  ;;  %v2192_v24 = vadd.f32 %v2140_v51, %v364_v40  ;;  %v1995_v30 = vadd.f32 %v3490_v35, %v5096_v2  ;;  %v369_v2 = vld [vmem:[#allocation2 + $0xf0] sm:$0xff]  ;;  %v5207_v63 = vadd.f32 (!%p3119_p11), %v5164_v48, %v2244_v1  ;;  %v5210_v54 = vadd.f32 (!%p3119_p11), %v5164_v48, %v2243_v0  ;;  %v2248_v51 = vld [vmem:[#allocation2 + $0x68] sm:$0xff] (!%p3119_p11) }
 0x2a6   : > { %2226 = vst [vmem:[#allocation2 + $0xd8] sm:$0xff] %v2194_v43  ;;  %v2314_v50 = vmul.f32 (!%p3119_p11), %v5193_v16, %v5193_v16  ;;  %v5213_v40 = vadd.f32 (!%p3119_p11), %v5164_v48, %v2246_v47  ;;  %v5220_v35 = vadd.f32 (!%p3119_p11), %v5164_v48, %v2245_v32  ;;  %v5223_v43 = vadd.f32 (!%p3119_p11), %v5164_v48, %v2248_v51 }
 0x2a7   : > { %2224 = vst [vmem:[#allocation2 + $0xc8] sm:$0xff] %v2192_v24  ;;  %v3491_v59 = vpop.f32.mrb[108].mxu0  ;;  %v3567_v46 = vpop.f32.mrb[108].mxu1  ;;  %v2316_v28 = vmul.f32 (!%p3119_p11), %v5207_v63, %v5207_v63  ;;  %v2315_v17 = vmul.f32 (!%p3119_p11), %v5210_v54, %v5210_v54 }
 0x2a8   : > { %v3492_v57 = vpop.f32.mrb[109].mxu0  ;;  %v2152_v34 = vpop.f32.mrb[109].mxu1  ;;  %v2318_v24 = vmul.f32 (!%p3119_p11), %v5213_v40, %v5213_v40 }
 0x2a9   : > { %v3493_v38 = vadd.f32 %v3492_v57, %v3491_v59  ;;  %v2153_v62 = vadd.f32 %v2152_v34, %v1992_v11  ;;  %v3494_v39 = vpop.f32.mrb[110].mxu0  ;;  %v3568_v21 = vpop.f32.mrb[110].mxu1  ;;  %v2247_v11 = vld [vmem:[#allocation2 + $0x60] sm:$0xff] (!%p3119_p11)  ;;  %v2249_v57 = vld [vmem:[#allocation2 + $0x70] sm:$0xff] (!%p3119_p11)  ;;  %v2320_v34 = vmul.f32 (!%p3119_p11), %v5223_v43, %v5223_v43 }
 0x2aa   : > { %v3495_v44 = vpop.f32.mrb[111].mxu0  ;;  %v2155_v37 = vpop.f32.mrb[111].mxu1  ;;  %v5230_v59 = vadd.f32 (!%p3119_p11), %v5164_v48, %v2247_v11 }
 0x2ab   : > { %v2000_v42 = vadd.f32 %v3493_v38, %v5102_v29  ;;  %v2195_v33 = vadd.f32 %v2153_v62, %v367_v31  ;;  %v3496_v25 = vadd.f32 %v3495_v44, %v3494_v39  ;;  %v2156_v6 = vadd.f32 %v2155_v37, %v1995_v30  ;;  %v2237_v29 = vld [vmem:[#allocation2 + $0x10] sm:$0xff] (!%p3119_p11)  ;;  %v2252_v39 = vld [vmem:[#allocation2 + $0x88] sm:$0xff] (!%p3119_p11) }
 0x2ac   : > { %v5167_v3 = vadd.f32 (!%p3119_p11), %v5164_v48, %v2237_v29  ;;  %v2317_v30 = vmul.f32 (!%p3119_p11), %v5220_v35, %v5220_v35  ;;  %v2319_v38 = vmul.f32 (!%p3119_p11), %v5230_v59, %v5230_v59  ;;  %v5240_v62 = vadd.f32 (!%p3119_p11), %v5164_v48, %v2249_v57  ;;  %v2261_v1 = vld [vmem:[#allocation2 + $0xd0] sm:$0xff] (!%p3119_p11) }
 0x2ad   : > { %v2161_v23 = vadd.f32 %v3567_v46, %v2000_v42  ;;  %2227 = vst [vmem:[#allocation2 + $0xe0] sm:$0xff] %v2195_v33  ;;  %v2003_v61 = vadd.f32 %v3496_v25, %v5108_v22  ;;  %v2196_v10 = vadd.f32 %v2156_v6, %v368_v4  ;;  %2234 = sbr.rel (%p3119_p11) target bundleno = 971 (0x3cb), region = 60  ;;  %v5170_v22 = vadd.f32 (!%p3119_p11), %v5164_v48, %v2235_v7  ;;  %v2250_v46 = vld [vmem:[#allocation2 + $0x78] sm:$0xff] (!%p3119_p11)  ;;  %v2253_v25 = vld [vmem:[#allocation2 + $0x90] sm:$0xff] (!%p3119_p11) }
 0x2ae   : > { %v2309_v36 = vmul.f32 (!%p3119_p11), %v5167_v3, %v5167_v3  ;;  %v5233_v31 = vadd.f32 (!%p3119_p11), %v5164_v48, %v2250_v46  ;;  %v2321_v4 = vmul.f32 (!%p3119_p11), %v5240_v62, %v5240_v62  ;;  %v5247_v37 = vadd.f32 (!%p3119_p11), %v5164_v48, %v2252_v39  ;;  %v2254_v33 = vld [vmem:[#allocation2 + $0x98] sm:$0xff] (!%p3119_p11) }
 0x2af   : > { %v2197_v53 = vadd.f32 %v2161_v23, %v369_v2  ;;  %v2164_v8 = vadd.f32 %v3568_v21, %v2003_v61  ;;  %2228 = vst [vmem:[#allocation2 + $0xe8] sm:$0xff] %v2196_v10  ;;  %v2307_v9 = vmul.f32 (!%p3119_p11), %v5170_v22, %v5170_v22  ;;  %v2251_v21 = vld [vmem:[#allocation2 + $0x80] sm:$0xff] (!%p3119_p11)  ;;  %v5253_v6 = vadd.f32 (!%p3119_p11), %v5164_v48, %v2254_v33  ;;  %v2256_v10 = vld [vmem:[#allocation2 + $0xa8] sm:$0xff] (!%p3119_p11)  ;;  %v2258_v7 = vld [vmem:[#allocation2 + $0xb8] sm:$0xff] (!%p3119_p11) }
 0x2b0   : > { %2343 = vadd.xlane.f32.xlu1 (!%p3119_p11), %v2309_v36  ;;  %v2322_v44 = vmul.f32 (!%p3119_p11), %v5233_v31, %v5233_v31  ;;  %v5250_v42 = vadd.f32 (!%p3119_p11), %v5164_v48, %v2251_v21  ;;  %v2324_v2 = vmul.f32 (!%p3119_p11), %v5247_v37, %v5247_v37  ;;  %v5260_v61 = vadd.f32 (!%p3119_p11), %v5164_v48, %v2253_v25 }
 0x2b1   : > { %2229 = vst [vmem:[#allocation2 + $0xf0] sm:$0xff] %v2197_v53  ;;  %v2198_v26 = vadd.f32 %v2164_v8, %v370_v55  ;;  %2339 = vadd.xlane.f32.xlu0 (!%p3119_p11), %v2307_v9  ;;  %v2255_v55 = vld [vmem:[#allocation2 + $0xa0] sm:$0xff] (!%p3119_p11)  ;;  %v5263_v53 = vadd.f32 (!%p3119_p11), %v5164_v48, %v2256_v10  ;;  %v2326_v8 = vmul.f32 (!%p3119_p11), %v5253_v6, %v5253_v6  ;;  %v2260_v9 = vld [vmem:[#allocation2 + $0xc8] sm:$0xff] (!%p3119_p11) }
 0x2b2   : > { %v2323_v23 = vmul.f32 (!%p3119_p11), %v5250_v42, %v5250_v42  ;;  %v5270_v29 = vadd.f32 (!%p3119_p11), %v5164_v48, %v2255_v55  ;;  %v5273_v58 = vadd.f32 (!%p3119_p11), %v5164_v48, %v2258_v7  ;;  %v5280_v36 = vadd.f32 (!%p3119_p11), %v5164_v48, %v2257_v49 }
 0x2b3   : > { %2230 = vst [vmem:[#allocation2 + $0xf8] sm:$0xff] %v2198_v26  ;;  %v2325_v26 = vmul.f32 (!%p3119_p11), %v5260_v61, %v5260_v61  ;;  %v2328_v56 = vmul.f32 (!%p3119_p11), %v5263_v53, %v5263_v53  ;;  %v5287_v14 = vadd.f32 (!%p3119_p11), %v5164_v48, %v2260_v9  ;;  %v5300_v47 = vadd.f32 (!%p3119_p11), %v5164_v48, %v2261_v1 }
 0x2b4   : > { %2345 = vadd.xlane.f32.xlu1 %v2310_v15  ;;  %v2327_v20 = vmul.f32 %v5270_v29, %v5270_v29  ;;  %v2259_v15 = vld [vmem:[#allocation2 + $0xc0] sm:$0xff]  ;;  %v2329_v41 = vmul.f32 %v5280_v36, %v5280_v36 }
 0x2b5   : > { %2341 = vadd.xlane.f32.xlu0 %v2308_v52  ;;  %v2330_v52 = vmul.f32 %v5273_v58, %v5273_v58  ;;  %v2333_v11 = vmul.f32 %v5300_v47, %v5300_v47 }
 0x2b6   : > { %v2264_v32 = vld [vmem:[#allocation2 + $0xe8] sm:$0xff] }
 0x2b8   : > { %2349 = vadd.xlane.f32.xlu1 %v2312_v18  ;;  %v5290_v18 = vadd.f32 %v5164_v48, %v2259_v15  ;;  %v2265_v46 = vld [vmem:[#allocation2 + $0xf0] sm:$0xff]  ;;  %v5326_v15 = vld [vmem:[#allocation9] ss:$0 sm:$0xff] }
 0x2b9   : > { %2347 = vadd.xlane.f32.xlu0 %v2311_v12  ;;  %v2262_v12 = vld [vmem:[#allocation2 + $0xd8] sm:$0xff]  ;;  %v5320_v39 = vadd.f32 %v5164_v48, %v2265_v46 }
 0x2ba   : > { %v5293_v0 = vadd.f32 %v5164_v48, %v2262_v12 }
 0x2bc   : > { %2353 = vadd.xlane.f32.xlu1 %v2314_v50  ;;  %v2332_v50 = vmul.f32 %v5287_v14, %v5287_v14  ;;  %v2334_v51 = vmul.f32 %v5293_v0, %v5293_v0 }
 0x2bd   : > { %2351 = vadd.xlane.f32.xlu0 %v2313_v27  ;;  %v2331_v27 = vmul.f32 %v5290_v18, %v5290_v18 }
 0x2c0   : > { %2357 = vadd.xlane.f32.xlu1 %v2316_v28  ;;  %v2263_v28 = vld [vmem:[#allocation2 + $0xe0] sm:$0xff] }
 0x2c1   : > { %2355 = vadd.xlane.f32.xlu0 %v2315_v17  ;;  %v5303_v17 = vadd.f32 %v5164_v48, %v2264_v32 }
 0x2c4   : > { %2361 = vadd.xlane.f32.xlu1 %v2318_v24  ;;  %v5310_v24 = vadd.f32 %v5164_v48, %v2263_v28 }
 0x2c5   : > { %2359 = vadd.xlane.f32.xlu0 %v2317_v30  ;;  %v2266_v30 = vld [vmem:[#allocation2 + $0xf8] sm:$0xff] }
 0x2c6   : > { %v5313_v57 = vadd.f32 %v5164_v48, %v2266_v30 }
 0x2c8   : > { %2365 = vadd.xlane.f32.xlu1 %v2320_v34  ;;  %v2336_v34 = vmul.f32 %v5303_v17, %v5303_v17  ;;  %v2338_v21 = vmul.f32 %v5313_v57, %v5313_v57 }
 0x2c9   : > { %2363 = vadd.xlane.f32.xlu0 %v2319_v38  ;;  %v2335_v38 = vmul.f32 %v5310_v24, %v5310_v24 }
 0x2cc   : > { %2369 = vadd.xlane.f32.xlu1 %v2322_v44  ;;  %v2337_v44 = vmul.f32 %v5320_v39, %v5320_v39 }
 0x2cd   : > { %2367 = vadd.xlane.f32.xlu0 %v2321_v4 }
 0x2d0   : > { %2373 = vadd.xlane.f32.xlu1 %v2324_v2 }
 0x2d1   : > { %2371 = vadd.xlane.f32.xlu0 %v2323_v23 }
 0x2d4   : > { %2377 = vadd.xlane.f32.xlu1 %v2326_v8 }
 0x2d5   : > { %2375 = vadd.xlane.f32.xlu0 %v2325_v26 }
 0x2d8   : > { %2381 = vadd.xlane.f32.xlu1 %v2328_v56 }
 0x2d9   : > { %2379 = vadd.xlane.f32.xlu0 %v2327_v20 }
 0x2dc   : > { %2385 = vadd.xlane.f32.xlu1 %v2330_v52 }
 0x2dd   : > { %2383 = vadd.xlane.f32.xlu0 %v2329_v41 }
 0x2e0   : > { %2389 = vadd.xlane.f32.xlu1 %v2332_v50 }
 0x2e1   : > { %2387 = vadd.xlane.f32.xlu0 %v2331_v27 }
 0x2e4   : > { %2393 = vadd.xlane.f32.xlu1 %v2334_v51 }
 0x2e5   : > { %2391 = vadd.xlane.f32.xlu0 %v2333_v11 }
 0x2e8   : > { %2397 = vadd.xlane.f32.xlu1 %v2336_v34 }
 0x2e9   : > { %2395 = vadd.xlane.f32.xlu0 %v2335_v38 }
 0x2ec   : > { %2401 = vadd.xlane.f32.xlu1 %v2338_v21 }
 0x2ed   : > { %2399 = vadd.xlane.f32.xlu0 %v2337_v44 }
 0x33d   : > { %v2344_v4 = vpop.xlane.xlu1 %2343 }
 0x33e   : > { %v2340_v33 = vpop.xlane.xlu0 %2339  ;;  %v2405_v25 = vmax.f32 %v2344_v4, 1e-24 }
 0x33f   : > { %v2403_v2 = vmax.f32 %v2340_v33, 1e-24 }
 0x340   : > { %3966 = vrsqrt.f32 %v2405_v25 }
 0x341   : > { %3968 = vrsqrt.f32 %v2403_v2  ;;  %v2346_v23 = vpop.xlane.xlu1 %2345 }
 0x342   : > { %v2342_v10 = vpop.xlane.xlu0 %2341  ;;  %v2406_v48 = vmax.f32 %v2346_v23, 1e-24 }
 0x343   : > { %v2404_v55 = vmax.f32 %v2342_v10, 1e-24 }
 0x344   : > { %3970 = vrsqrt.f32 %v2406_v48 }
 0x345   : > { %3972 = vrsqrt.f32 %v2404_v55  ;;  %v2350_v8 = vpop.xlane.xlu1 %2349 }
 0x346   : > { %v2348_v26 = vpop.xlane.xlu0 %2347  ;;  %v2408_v7 = vmax.f32 %v2350_v8, 1e-24 }
 0x347   : > { %v2407_v49 = vmax.f32 %v2348_v26, 1e-24 }
 0x348   : > { %3974 = vrsqrt.f32 %v2408_v7 }
 0x349   : > { %3976 = vrsqrt.f32 %v2407_v49  ;;  %v2354_v56 = vpop.xlane.xlu1 %2353 }
 0x34a   : > { %v2352_v20 = vpop.xlane.xlu0 %2351  ;;  %v3967_v9 = vpop.eup %3966  ;;  %v2410_v52 = vmax.f32 %v2354_v56, 1e-24 }
 0x34b   : > { %v2409_v41 = vmax.f32 %v2352_v20, 1e-24  ;;  %v3969_v12 = vpop.eup %3968  ;;  %v2469_v1 = vmul.f32 %v3967_v9, %v5167_v3 }
 0x34c   : > { %v2467_v50 = vmul.f32 %v3969_v12, %v5170_v22  ;;  %3978 = vrsqrt.f32 %v2410_v52 }
 0x34d   : > { %v5331_v27 = vmul.f32 %v5326_v15, %v2469_v1  ;;  %3980 = vrsqrt.f32 %v2409_v41  ;;  %v2358_v32 = vpop.xlane.xlu1 %2357 }
 0x34e   : > { %v2356_v28 = vpop.xlane.xlu0 %2355  ;;  %v3971_v51 = vpop.eup %3970  ;;  %v5334_v11 = vmul.f32 %v5326_v15, %v2467_v50  ;;  %v2412_v30 = vmax.f32 %v2358_v32, 1e-24 }
 0x34f   : > { %v3973_v46 = vpop.eup %3972  ;;  %v3124_v34 = vmul.f32 -1.442695, %v5331_v27  ;;  %v2470_v38 = vmul.f32 %v3971_v51, %v5173_v5  ;;  %v2411_v3 = vmax.f32 %v2356_v28, 1e-24 }
 0x350   : > { %v3122_v22 = vmul.f32 -1.442695, %v5334_v11  ;;  %v2468_v21 = vmul.f32 %v3973_v46, %v5176_v60  ;;  %3982 = vrsqrt.f32 %v2412_v30 }
 0x351   : > { %3984 = vpow2.f32 %v3124_v34  ;;  %v5341_v44 = vmul.f32 %v5326_v15, %v2470_v38  ;;  %v2362_v4 = vpop.xlane.xlu1 %2361 }
 0x352   : > { %v2360_v33 = vpop.xlane.xlu0 %2359  ;;  %v3975_v25 = vpop.eup %3974  ;;  %3986 = vpow2.f32 %v3122_v22  ;;  %v5344_v2 = vmul.f32 %v5326_v15, %v2468_v21  ;;  %v2414_v23 = vmax.f32 %v2362_v4, 1e-24 }
 0x353   : > { %v3977_v10 = vpop.eup %3976  ;;  %v3125_v5 = vmul.f32 -1.442695, %v5341_v44  ;;  %v2472_v48 = vmul.f32 %v3975_v25, %v5183_v45  ;;  %3988 = vrsqrt.f32 %v2411_v3  ;;  %v2413_v60 = vmax.f32 %v2360_v33, 1e-24 }
 0x354   : > { %v3123_v55 = vmul.f32 -1.442695, %v5344_v2  ;;  %v2471_v8 = vmul.f32 %v3977_v10, %v5190_v13  ;;  %3990 = vrsqrt.f32 %v2414_v23 }
 0x355   : > { %3992 = vpow2.f32 %v3125_v5  ;;  %v5351_v26 = vmul.f32 %v5326_v15, %v2472_v48  ;;  %v2366_v7 = vpop.xlane.xlu1 %2365 }
 0x356   : > { %v2364_v49 = vpop.xlane.xlu0 %2363  ;;  %v3979_v56 = vpop.eup %3978  ;;  %3994 = vpow2.f32 %v3123_v55  ;;  %v5354_v20 = vmul.f32 %v5326_v15, %v2471_v8  ;;  %v2416_v9 = vmax.f32 %v2366_v7, 1e-24 }
 0x357   : > { %v3981_v45 = vpop.eup %3980  ;;  %v3127_v52 = vmul.f32 -1.442695, %v5351_v26  ;;  %v2474_v41 = vmul.f32 %v3979_v56, %v5193_v16  ;;  %3996 = vrsqrt.f32 %v2413_v60  ;;  %v2415_v13 = vmax.f32 %v2364_v49, 1e-24 }
 0x358   : > { %v3126_v12 = vmul.f32 -1.442695, %v5354_v20  ;;  %v2473_v1 = vmul.f32 %v3981_v45, %v5200_v19  ;;  %3998 = vrsqrt.f32 %v2416_v9 }
 0x359   : > { %4000 = vpow2.f32 %v3127_v52  ;;  %v5361_v50 = vmul.f32 %v5326_v15, %v2474_v41  ;;  %v2370_v32 = vpop.xlane.xlu1 %2369 }
 0x35a   : > { %v5363_v28 = vpop.xlane.xlu0 %2367  ;;  %v3983_v51 = vpop.eup %3982  ;;  %4002 = vpow2.f32 %v3126_v12  ;;  %v5366_v30 = vmul.f32 %v5326_v15, %v2473_v1  ;;  %v2418_v16 = vmax.f32 %v2370_v32, 1e-24 }
 0x35b   : > { %v3985_v46 = vpop.eup %3984  ;;  %v3129_v34 = vmul.f32 -1.442695, %v5361_v50  ;;  %v2476_v38 = vmul.f32 %v3983_v51, %v5207_v63  ;;  %4004 = vrsqrt.f32 %v2415_v13 }
 0x35c   : > { %v3987_v19 = vpop.eup %3986  ;;  %v2635_v3 = vadd.f32 1.0, %v3985_v46  ;;  %v3128_v22 = vmul.f32 -1.442695, %v5366_v30  ;;  %4006 = vrsqrt.f32 %v2418_v16 }
 0x35d   : > { %v3989_v21 = vpop.eup %3988  ;;  %v2633_v4 = vadd.f32 1.0, %v3987_v19  ;;  %4008 = vpow2.f32 %v3129_v34  ;;  %v5372_v33 = vmul.f32 %v5326_v15, %v2476_v38  ;;  %v5374_v25 = vpop.xlane.xlu1 %2373 }
 0x35e   : > { %v5376_v23 = vpop.xlane.xlu0 %2371  ;;  %v3991_v10 = vpop.eup %3990  ;;  %4010 = vrcp.f32 %v2635_v3  ;;  %v2475_v63 = vmul.f32 %v3989_v21, %v5210_v54 }
 0x35f   : > { %v3993_v5 = vpop.eup %3992  ;;  %4012 = vrcp.f32 %v2633_v4  ;;  %v3131_v48 = vmul.f32 -1.442695, %v5372_v33  ;;  %v2478_v60 = vmul.f32 %v3991_v10, %v5213_v40  ;;  %v2417_v4 = vmax.f32 %v5363_v28, 1e-24 }
 0x360   : > { %v3995_v55 = vpop.eup %3994  ;;  %v2636_v8 = vadd.f32 1.0, %v3993_v5  ;;  %4014 = vpow2.f32 %v3128_v22  ;;  %v5382_v7 = vmul.f32 %v5326_v15, %v2475_v63 }
 0x361   : > { %v3997_v49 = vpop.eup %3996  ;;  %v2634_v56 = vadd.f32 1.0, %v3995_v55  ;;  %4016 = vpow2.f32 %v3131_v48  ;;  %v5385_v9 = vmul.f32 %v5326_v15, %v2478_v60  ;;  %v5387_v45 = vpop.xlane.xlu1 %2377 }
 0x362   : > { %v3999_v54 = vpop.eup %3998  ;;  %4018 = vrcp.f32 %v2636_v8  ;;  %v3130_v52 = vmul.f32 -1.442695, %v5382_v7  ;;  %v2477_v40 = vmul.f32 %v3997_v49, %v5220_v35  ;;  %v5391_v41 = vpop.xlane.xlu0 %2375 }
 0x363   : > { %v4001_v13 = vpop.eup %4000  ;;  %4020 = vrcp.f32 %v2634_v56  ;;  %v3133_v12 = vmul.f32 -1.442695, %v5385_v9  ;;  %v2480_v1 = vmul.f32 %v3999_v54, %v5223_v43 }
 0x364   : > { %v4003_v32 = vpop.eup %4002  ;;  %v2638_v51 = vadd.f32 1.0, %v4001_v13  ;;  %4022 = vpow2.f32 %v3130_v52  ;;  %v5396_v16 = vmul.f32 %v5326_v15, %v2477_v40  ;;  %v2420_v13 = vmax.f32 %v5374_v25, 1e-24 }
 0x365   : > { %v4005_v46 = vpop.eup %4004  ;;  %v2637_v34 = vadd.f32 1.0, %v4003_v32  ;;  %4024 = vpow2.f32 %v3133_v12  ;;  %v5399_v38 = vmul.f32 %v5326_v15, %v2480_v1  ;;  %v5406_v10 = vpop.xlane.xlu1 %2381 }
 0x366   : > { %v4007_v35 = vpop.eup %4006  ;;  %4026 = vrcp.f32 %v2638_v51  ;;  %v3132_v19 = vmul.f32 -1.442695, %v5396_v16  ;;  %v2479_v3 = vmul.f32 %v4005_v46, %v5230_v59  ;;  %v5411_v60 = vpop.xlane.xlu0 %2379 }
 0x367   : > { %v4009_v22 = vpop.eup %4008  ;;  %4028 = vrcp.f32 %v2637_v34  ;;  %v3135_v43 = vmul.f32 -1.442695, %v5399_v38  ;;  %v2482_v21 = vmul.f32 %v4007_v35, %v5233_v31 }
 0x368   : > { %v4011_v63 = vpop.eup %4010  ;;  %v2640_v5 = vadd.f32 1.0, %v4009_v22  ;;  %4030 = vpow2.f32 %v3132_v19  ;;  %v5409_v48 = vmul.f32 %v5326_v15, %v2479_v3  ;;  %v2419_v19 = vmax.f32 %v5376_v23, 1e-24 }
 0x369   : > { %v4013_v59 = vpop.eup %4012  ;;  %v2731_v55 = vmul.f32 %v4011_v63, %v5331_v27  ;;  %4032 = vpow2.f32 %v3135_v43  ;;  %v5415_v31 = vmul.f32 %v5326_v15, %v2482_v21  ;;  %v5424_v1 = vpop.xlane.xlu1 %2385  ;;  %v2421_v23 = vmax.f32 %v5391_v41, 1e-24 }
 0x36a   : > { %v4015_v28 = vpop.eup %4014  ;;  %v2729_v8 = vmul.f32 %v4013_v59, %v5334_v11  ;;  %4034 = vrcp.f32 %v2640_v5  ;;  %v3134_v49 = vmul.f32 -1.442695, %v5409_v48  ;;  %v5427_v46 = vpop.xlane.xlu0 %2383  ;;  %v2423_v41 = vmax.f32 %v5411_v60, 1e-24 }
 0x36b   : > { %v4017_v56 = vpop.eup %4016  ;;  %2763 = vst [vmem:[%s4791_s0 + $0x10] sm:$0xff] %v2731_v55  ;;  %v2639_v54 = vadd.f32 1.0, %v4015_v28  ;;  %v3137_v52 = vmul.f32 -1.442695, %v5415_v31  ;;  %4036 = vrsqrt.f32 %v2417_v4 }
 0x36c   : > { %v4019_v40 = vpop.eup %4018  ;;  %2761 = vst [vmem:[%s4791_s0] sm:$0xff] %v2729_v8  ;;  %v2642_v27 = vadd.f32 1.0, %v4017_v56  ;;  %4038 = vpow2.f32 %v3134_v49 }
 0x36d   : > { %v4021_v12 = vpop.eup %4020  ;;  %v2732_v11 = vmul.f32 %v4019_v40, %v5341_v44  ;;  %4040 = vrcp.f32 %v2639_v54  ;;  %v2422_v44 = vmax.f32 %v5387_v45, 1e-24  ;;  %v2390_v5 = vpop.xlane.xlu1 %2389  ;;  %v2424_v45 = vmax.f32 %v5406_v10, 1e-24 }
 0x36e   : > { %v4023_v32 = vpop.eup %4022  ;;  %v2730_v51 = vmul.f32 %v4021_v12, %v5344_v2  ;;  %4042 = vrcp.f32 %v2642_v27 }
 0x36f   : > { %v4025_v34 = vpop.eup %4024  ;;  %2764 = vst [vmem:[%s4791_s0 + $0x18] sm:$0xff] %v2732_v11  ;;  %v2641_v35 = vadd.f32 1.0, %v4023_v32  ;;  %4044 = vpow2.f32 %v3137_v52  ;;  %v2426_v52 = vmax.f32 %v5424_v1, 1e-24  ;;  %v2425_v1 = vmax.f32 %v5427_v46, 1e-24 }
 0x370   : > { %v4027_v25 = vpop.eup %4026  ;;  %2762 = vst [vmem:[%s4791_s0 + $0x8] sm:$0xff] %v2730_v51  ;;  %v2644_v3 = vadd.f32 1.0, %v4025_v34  ;;  %4046 = vrsqrt.f32 %v2420_v13  ;;  %v2428_v34 = vmax.f32 %v2390_v5, 1e-24 }
 0x371   : > { %v4029_v22 = vpop.eup %4028  ;;  %v2734_v2 = vmul.f32 %v4027_v25, %v5351_v26  ;;  %4048 = vrcp.f32 %v2641_v35  ;;  %v2388_v26 = vpop.xlane.xlu0 %2387 }
 0x372   : > { %v4031_v43 = vpop.eup %4030  ;;  %v2733_v21 = vmul.f32 %v4029_v22, %v5354_v20  ;;  %4050 = vrcp.f32 %v2644_v3  ;;  %v2394_v13 = vpop.xlane.xlu1 %2393 }
 0x373   : > { %v4033_v4 = vpop.eup %4032  ;;  %2766 = vst [vmem:[%s4791_s0 + $0x28] sm:$0xff] %v2734_v2  ;;  %v2643_v63 = vadd.f32 1.0, %v4031_v43  ;;  %4052 = vrsqrt.f32 %v2419_v19  ;;  %v2427_v19 = vmax.f32 %v2388_v26, 1e-24 }
 0x374   : > { %v4035_v59 = vpop.eup %4034  ;;  %2765 = vst [vmem:[%s4791_s0 + $0x20] sm:$0xff] %v2733_v21  ;;  %v2646_v55 = vadd.f32 1.0, %v4033_v4  ;;  %4054 = vrsqrt.f32 %v2422_v44 }
 0x375   : > { %v4037_v28 = vpop.eup %4036  ;;  %v2736_v8 = vmul.f32 %v4035_v59, %v5361_v50  ;;  %4056 = vrcp.f32 %v2643_v63  ;;  %v2392_v32 = vpop.xlane.xlu0 %2391 }
 0x376   : > { %v4039_v20 = vpop.eup %4038  ;;  %4058 = vrcp.f32 %v2646_v55  ;;  %v2481_v49 = vmul.f32 %v4037_v28, %v5240_v62  ;;  %v2429_v21 = vmax.f32 %v2392_v32, 1e-24 }
 0x377   : > { %v4041_v56 = vpop.eup %4040  ;;  %2768 = vst [vmem:[%s4791_s0 + $0x38] sm:$0xff] %v2736_v8  ;;  %v2645_v54 = vadd.f32 1.0, %v4039_v20  ;;  %4060 = vrsqrt.f32 %v2421_v23 }
 0x378   : > { %v4043_v40 = vpop.eup %4042  ;;  %v2735_v10 = vmul.f32 %v4041_v56, %v5366_v30  ;;  %v5446_v50 = vmul.f32 %v5326_v15, %v2481_v49  ;;  %4062 = vrsqrt.f32 %v2424_v45 }
 0x379   : > { %v4045_v27 = vpop.eup %4044  ;;  %v2738_v62 = vmul.f32 %v4043_v40, %v5372_v33  ;;  %4064 = vrcp.f32 %v2645_v54 }
 0x37a   : > { %v4047_v60 = vpop.eup %4046  ;;  %2767 = vst [vmem:[%s4791_s0 + $0x30] sm:$0xff] %v2735_v10  ;;  %v2648_v12 = vadd.f32 1.0, %v4045_v27  ;;  %v3136_v11 = vmul.f32 -1.442695, %v5446_v50  ;;  %4066 = vrsqrt.f32 %v2423_v41 }
 0x37b   : > { %v4049_v30 = vpop.eup %4048  ;;  %2770 = vst [vmem:[%s4791_s0 + $0x48] sm:$0xff] %v2738_v62  ;;  %v2484_v51 = vmul.f32 %v4047_v60, %v5247_v37  ;;  %4068 = vrsqrt.f32 %v2426_v52  ;;  %v2430_v37 = vmax.f32 %v2394_v13, 1e-24 }
 0x37c   : > { %v4051_v33 = vpop.eup %4050  ;;  %v2737_v35 = vmul.f32 %v4049_v30, %v5382_v7  ;;  %4070 = vrcp.f32 %v2648_v12 }
 0x37d   : > { %v4053_v25 = vpop.eup %4052  ;;  %v2740_v3 = vmul.f32 %v4051_v33, %v5385_v9  ;;  %4072 = vpow2.f32 %v3136_v11  ;;  %v5457_v46 = vmul.f32 %v5326_v15, %v2484_v51  ;;  %v2398_v9 = vpop.xlane.xlu1 %2397 }
 0x37e   : > { %v4055_v44 = vpop.eup %4054  ;;  %2769 = vst [vmem:[%s4791_s0 + $0x40] sm:$0xff] %v2737_v35  ;;  %v2483_v22 = vmul.f32 %v4053_v25, %v5250_v42  ;;  %4074 = vrsqrt.f32 %v2425_v1  ;;  %v2396_v42 = vpop.xlane.xlu0 %2395 }
 0x37f   : > { %v4057_v2 = vpop.eup %4056  ;;  %2772 = vst [vmem:[%s4791_s0 + $0x58] sm:$0xff] %v2740_v3  ;;  %v3139_v7 = vmul.f32 -1.442695, %v5457_v46  ;;  %v2486_v43 = vmul.f32 %v4055_v44, %v5253_v6  ;;  %4076 = vrsqrt.f32 %v2428_v34 }
 0x380   : > { %v4059_v4 = vpop.eup %4058  ;;  %v2739_v63 = vmul.f32 %v4057_v2, %v5396_v16  ;;  %v5466_v23 = vmul.f32 %v5326_v15, %v2483_v22  ;;  %4078 = vrsqrt.f32 %v2427_v19  ;;  %v2432_v16 = vmax.f32 %v2398_v9, 1e-24 }
 0x381   : > { %v4061_v5 = vpop.eup %4060  ;;  %v2742_v59 = vmul.f32 %v4059_v4, %v5399_v38  ;;  %4080 = vpow2.f32 %v3139_v7  ;;  %v5470_v55 = vmul.f32 %v5326_v15, %v2486_v43  ;;  %v2431_v38 = vmax.f32 %v2396_v42, 1e-24 }
 0x382   : > { %v4063_v6 = vpop.eup %4062  ;;  %2771 = vst [vmem:[%s4791_s0 + $0x50] sm:$0xff] %v2739_v63  ;;  %v3138_v45 = vmul.f32 -1.442695, %v5466_v23  ;;  %v2485_v26 = vmul.f32 %v4061_v5, %v5260_v61  ;;  %4082 = vrsqrt.f32 %v2430_v37 }
 0x383   : > { %v4065_v28 = vpop.eup %4064  ;;  %2774 = vst [vmem:[%s4791_s0 + $0x68] sm:$0xff] %v2742_v59  ;;  %v3141_v8 = vmul.f32 -1.442695, %v5470_v55  ;;  %v2488_v20 = vmul.f32 %v4063_v6, %v5263_v53  ;;  %4084 = vrsqrt.f32 %v2429_v21 }
 0x384   : > { %v4067_v49 = vpop.eup %4066  ;;  %v2741_v41 = vmul.f32 %v4065_v28, %v5409_v48  ;;  %4086 = vpow2.f32 %v3138_v45  ;;  %v5480_v56 = vmul.f32 %v5326_v15, %v2485_v26  ;;  %v2402_v48 = vpop.xlane.xlu1 %2401 }
 0x385   : > { %v4069_v54 = vpop.eup %4068  ;;  %4088 = vpow2.f32 %v3141_v8  ;;  %v5483_v61 = vmul.f32 %v5326_v15, %v2488_v20  ;;  %v2487_v52 = vmul.f32 %v4067_v49, %v5270_v29 }
 0x386   : > { %v4071_v40 = vpop.eup %4070  ;;  %2773 = vst [vmem:[%s4791_s0 + $0x60] sm:$0xff] %v2741_v41  ;;  %v3140_v53 = vmul.f32 -1.442695, %v5480_v56  ;;  %v2490_v10 = vmul.f32 %v4069_v54, %v5273_v58  ;;  %4090 = vrsqrt.f32 %v2432_v16 }
 0x387   : > { %v4073_v27 = vpop.eup %4072  ;;  %v2744_v62 = vmul.f32 %v4071_v40, %v5415_v31  ;;  %v3143_v13 = vmul.f32 -1.442695, %v5483_v61  ;;  %v5492_v60 = vmul.f32 %v5326_v15, %v2487_v52  ;;  %4092 = vrsqrt.f32 %v2431_v38 }
 0x388   : > { %v4075_v12 = vpop.eup %4074  ;;  %v2647_v29 = vadd.f32 1.0, %v4073_v27  ;;  %4094 = vpow2.f32 %v3140_v53  ;;  %v5495_v11 = vmul.f32 %v5326_v15, %v2490_v10  ;;  %v2434_v31 = vmax.f32 %v2402_v48, 1e-24 }
 0x389   : > { %v4077_v1 = vpop.eup %4076  ;;  %2776 = vst [vmem:[%s4791_s0 + $0x78] sm:$0xff] %v2744_v62  ;;  %4096 = vpow2.f32 %v3143_v13  ;;  %v3142_v58 = vmul.f32 -1.442695, %v5492_v60  ;;  %v2489_v32 = vmul.f32 %v4075_v12, %v5280_v36  ;;  %v2400_v62 = vpop.xlane.xlu0 %2399 }
 0x38a   : > { %v4079_v30 = vpop.eup %4078  ;;  %4098 = vrcp.f32 %v2647_v29  ;;  %v3145_v51 = vmul.f32 -1.442695, %v5495_v11  ;;  %v2492_v34 = vmul.f32 %v4077_v1, %v5287_v14 }
 0x38b   : > { %v4081_v33 = vpop.eup %4080  ;;  %4100 = vpow2.f32 %v3142_v58  ;;  %v5503_v35 = vmul.f32 %v5326_v15, %v2489_v32  ;;  %v2491_v19 = vmul.f32 %v4079_v30, %v5290_v18 }
 0x38c   : > { %v4083_v25 = vpop.eup %4082  ;;  %v2650_v3 = vadd.f32 1.0, %v4081_v33  ;;  %4102 = vpow2.f32 %v3145_v51  ;;  %v5507_v44 = vmul.f32 %v5326_v15, %v2492_v34 }
 0x38d   : > { %v4085_v36 = vpop.eup %4084  ;;  %v3144_v22 = vmul.f32 -1.442695, %v5503_v35  ;;  %v5511_v37 = vmul.f32 %v5326_v15, %v2491_v19  ;;  %v2494_v14 = vmul.f32 %v4083_v25, %v5293_v0  ;;  %4104 = vrsqrt.f32 %v2434_v31 }
 0x38e   : > { %v4087_v2 = vpop.eup %4086  ;;  %4106 = vrcp.f32 %v2650_v3  ;;  %v3147_v7 = vmul.f32 -1.442695, %v5507_v44  ;;  %v2493_v18 = vmul.f32 %v4085_v36, %v5300_v47  ;;  %v2433_v31 = vmax.f32 %v2400_v62, 1e-24 }
 0x38f   : > { %v4089_v43 = vpop.eup %4088  ;;  %v2649_v21 = vadd.f32 1.0, %v4087_v2  ;;  %4108 = vpow2.f32 %v3144_v22  ;;  %v3146_v9 = vmul.f32 -1.442695, %v5511_v37  ;;  %v5518_v4 = vmul.f32 %v5326_v15, %v2494_v14 }
 0x390   : > { %v4091_v63 = vpop.eup %4090  ;;  %v2652_v42 = vadd.f32 1.0, %v4089_v43  ;;  %4110 = vpow2.f32 %v3147_v7  ;;  %v5521_v0 = vmul.f32 %v5326_v15, %v2493_v18 }
 0x391   : > { %v4093_v5 = vpop.eup %4092  ;;  %4112 = vrcp.f32 %v2649_v21  ;;  %v3149_v59 = vmul.f32 -1.442695, %v5518_v4  ;;  %v2496_v47 = vmul.f32 %v4091_v63, %v5303_v17 }
 0x392   : > { %v4095_v6 = vpop.eup %4094  ;;  %4114 = vrcp.f32 %v2652_v42  ;;  %v2495_v45 = vmul.f32 %v4093_v5, %v5310_v24  ;;  %v3148_v28 = vmul.f32 -1.442695, %v5521_v0 }
 0x393   : > { %v4097_v26 = vpop.eup %4096  ;;  %v2651_v16 = vadd.f32 1.0, %v4095_v6  ;;  %4116 = vpow2.f32 %v3146_v9  ;;  %v5528_v8 = vmul.f32 %v5326_v15, %v2496_v47 }
 0x394   : > { %v4099_v20 = vpop.eup %4098  ;;  %v2654_v38 = vadd.f32 1.0, %v4097_v26  ;;  %4118 = vpow2.f32 %v3149_v59  ;;  %v5531_v49 = vmul.f32 %v5326_v15, %v2495_v45 }
 0x395   : > { %v4101_v17 = vpop.eup %4100  ;;  %v2743_v41 = vmul.f32 %v4099_v20, %v5446_v50  ;;  %4120 = vrcp.f32 %v2651_v16  ;;  %v3151_v52 = vmul.f32 -1.442695, %v5528_v8 }
 0x396   : > { %v4103_v24 = vpop.eup %4102  ;;  %4122 = vrcp.f32 %v2654_v38  ;;  %v2653_v54 = vadd.f32 1.0, %v4101_v17  ;;  %v3150_v10 = vmul.f32 -1.442695, %v5531_v49 }
 0x397   : > { %v4105_v40 = vpop.eup %4104  ;;  %2775 = vst [vmem:[%s4791_s0 + $0x70] sm:$0xff] %v2743_v41  ;;  %v2656_v53 = vadd.f32 1.0, %v4103_v24  ;;  %4124 = vpow2.f32 %v3148_v28 }
 0x398   : > { %v4107_v48 = vpop.eup %4106  ;;  %4126 = vrcp.f32 %v2653_v54  ;;  %v2498_v27 = vmul.f32 %v4105_v40, %v5313_v57 }
 0x399   : > { %v4109_v13 = vpop.eup %4108  ;;  %v2746_v50 = vmul.f32 %v4107_v48, %v5457_v46  ;;  %4128 = vrcp.f32 %v2656_v53 }
 0x39a   : > { %v4111_v12 = vpop.eup %4110  ;;  %v2655_v29 = vadd.f32 1.0, %v4109_v13  ;;  %4130 = vpow2.f32 %v3151_v52  ;;  %v5540_v1 = vmul.f32 %v5326_v15, %v2498_v27 }
 0x39b   : > { %v4113_v58 = vpop.eup %4112  ;;  %2778 = vst [vmem:[%s4791_s0 + $0x88] sm:$0xff] %v2746_v50  ;;  %v2658_v32 = vadd.f32 1.0, %v4111_v12  ;;  %4132 = vpow2.f32 %v3150_v10 }
 0x39c   : > { %v4115_v30 = vpop.eup %4114  ;;  %v2745_v57 = vmul.f32 %v4113_v58, %v5466_v23  ;;  %4134 = vrcp.f32 %v2655_v29  ;;  %v3153_v46 = vmul.f32 -1.442695, %v5540_v1 }
 0x39d   : > { %v4117_v51 = vpop.eup %4116  ;;  %v2748_v34 = vmul.f32 %v4115_v30, %v5470_v55  ;;  %4136 = vrcp.f32 %v2658_v32 }
 0x39e   : > { %v4119_v33 = vpop.eup %4118  ;;  %2777 = vst [vmem:[%s4791_s0 + $0x80] sm:$0xff] %v2745_v57  ;;  %v2657_v19 = vadd.f32 1.0, %v4117_v51  ;;  %4138 = vpow2.f32 %v3153_v46 }
 0x39f   : > { %v4121_v25 = vpop.eup %4120  ;;  %2780 = vst [vmem:[%s4791_s0 + $0x98] sm:$0xff] %v2748_v34  ;;  %v2660_v3 = vadd.f32 1.0, %v4119_v33  ;;  %4140 = vrsqrt.f32 %v2433_v31 }
 0x3a0   : > { %v4123_v36 = vpop.eup %4122  ;;  %v2747_v23 = vmul.f32 %v4121_v25, %v5480_v56  ;;  %4142 = vrcp.f32 %v2657_v19 }
 0x3a1   : > { %v4125_v22 = vpop.eup %4124  ;;  %v2750_v55 = vmul.f32 %v4123_v36, %v5483_v61  ;;  %4144 = vrcp.f32 %v2660_v3 }
 0x3a2   : > { %v4127_v14 = vpop.eup %4126  ;;  %2779 = vst [vmem:[%s4791_s0 + $0x90] sm:$0xff] %v2747_v23  ;;  %v2659_v2 = vadd.f32 1.0, %v4125_v22 }
 0x3a3   : > { %v4129_v7 = vpop.eup %4128  ;;  %2782 = vst [vmem:[%s4791_s0 + $0xa8] sm:$0xff] %v2750_v55  ;;  %v2749_v18 = vmul.f32 %v4127_v14, %v5492_v60 }
 0x3a4   : > { %v4131_v43 = vpop.eup %4130  ;;  %v2752_v21 = vmul.f32 %v4129_v7, %v5495_v11  ;;  %4146 = vrcp.f32 %v2659_v2 }
 0x3a5   : > { %v4133_v9 = vpop.eup %4132  ;;  %2781 = vst [vmem:[%s4791_s0 + $0xa0] sm:$0xff] %v2749_v18  ;;  %v2662_v56 = vadd.f32 1.0, %v4131_v43 }
 0x3a6   : > { %v4135_v63 = vpop.eup %4134  ;;  %2784 = vst [vmem:[%s4791_s0 + $0xb8] sm:$0xff] %v2752_v21  ;;  %v2661_v61 = vadd.f32 1.0, %v4133_v9 }
 0x3a7   : > { %v4137_v42 = vpop.eup %4136  ;;  %v2751_v5 = vmul.f32 %v4135_v63, %v5503_v35  ;;  %4148 = vrcp.f32 %v2662_v56 }
 0x3a8   : > { %v4139_v59 = vpop.eup %4138  ;;  %v2754_v60 = vmul.f32 %v4137_v42, %v5507_v44  ;;  %4150 = vrcp.f32 %v2661_v61 }
 0x3a9   : > { %v4141_v47 = vpop.eup %4140  ;;  %2783 = vst [vmem:[%s4791_s0 + $0xb0] sm:$0xff] %v2751_v5  ;;  %v2664_v11 = vadd.f32 1.0, %v4139_v59 }
 0x3aa   : > { %v4143_v6 = vpop.eup %4142  ;;  %2786 = vst [vmem:[%s4791_s0 + $0xc8] sm:$0xff] %v2754_v60  ;;  %v2497_v45 = vmul.f32 %v4141_v47, %v5320_v39 }
 0x3ab   : > { %v4145_v26 = vpop.eup %4144  ;;  %v2753_v16 = vmul.f32 %v4143_v6, %v5511_v37  ;;  %4152 = vrcp.f32 %v2664_v11 }
 0x3ac   : > { %v2756_v35 = vmul.f32 %v4145_v26, %v5518_v4  ;;  %v2535_v28 = vmul.f32 %v5326_v15, %v2497_v45 }
 0x3ad   : > { %2785 = vst [vmem:[%s4791_s0 + $0xc0] sm:$0xff] %v2753_v16 }
 0x3ae   : > { %v4147_v44 = vpop.eup %4146  ;;  %2788 = vst [vmem:[%s4791_s0 + $0xd8] sm:$0xff] %v2756_v35  ;;  %v3152_v20 = vmul.f32 -1.442695, %v2535_v28 }
 0x3af   : > { %v2755_v38 = vmul.f32 %v4147_v44, %v5521_v0 }
 0x3b0   : > { %4154 = vpow2.f32 %v3152_v20 }
 0x3b1   : > { %v4149_v39 = vpop.eup %4148  ;;  %2787 = vst [vmem:[%s4791_s0 + $0xd0] sm:$0xff] %v2755_v38 }
 0x3b2   : > { %v4151_v17 = vpop.eup %4150  ;;  %v2758_v37 = vmul.f32 %v4149_v39, %v5528_v8 }
 0x3b3   : > { %v2757_v41 = vmul.f32 %v4151_v17, %v5531_v49 }
 0x3b4   : > { %2790 = vst [vmem:[%s4791_s0 + $0xe8] sm:$0xff] %v2758_v37 }
 0x3b5   : > { %v4153_v4 = vpop.eup %4152  ;;  %2789 = vst [vmem:[%s4791_s0 + $0xe0] sm:$0xff] %v2757_v41 }
 0x3b6   : > { %v2760_v15 = vmul.f32 %v4153_v4, %v5540_v1 }
 0x3b8   : > { %2792 = vst [vmem:[%s4791_s0 + $0xf8] sm:$0xff] %v2760_v15 }
 0x3ba   : > { %v4155_v24 = vpop.eup %4154 }
 0x3bb   : > { %v2663_v54 = vadd.f32 1.0, %v4155_v24 }
 0x3bd   : > { %4156 = vrcp.f32 %v2663_v54 }
 0x3c7   : > { %v4157_v52 = vpop.eup %4156 }
 0x3c8   : > { %v2759_v0 = vmul.f32 %v4157_v52, %v2535_v28 }
 0x3ca   : > { %2791 = vst [vmem:[%s4791_s0 + $0xf0] sm:$0xff] %v2759_v0 }
 0x3cb PF: > { %s5733_s25 = sld [smem:[#allocation21_spill]]  ;;  %s5735_s13 = sld [smem:[#allocation24_spill]] }
 0x3cc   : > { %s5736_s19 = sld [smem:[#allocation31_spill]]  ;;  %s2807_s16 = sshll.u32 %s4791_s0, 4  ;;  %s5582_s16 = int_to_ptr.vmem [resolvable:$true] %s2807_s16 }
 0x3cd   : > { %s5586_s21 = scalar_lea.sflag [#allocation5], %s295_s8  ;;  %s4274_s27 = scalar_lea.vmem %s5582_s16, 4096 }
 0x3ce   : > { %p4275_p2 = scmp.ne.s32.totalorder %s5582_s16, %s4274_s27  ;;  %s4444_s18 = smov [#allocation11]  }
 0x3cf   : > { %s4278_s12 = sshll.u32 %s4444_s18, 4  ;;  %s4279_s12 = int_to_ptr.vmem [resolvable:$false] %s4278_s12 }
 0x3d0   : > { %s4280_s2 = scalar_lea.vmem %s4279_s12, 8192  ;;  %p4281_p12 = scmp.lt.s32.totalorder %s5582_s16, %s4279_s12 }
 0x3d1   : > { %s3160_s7 = sshll.u32 %s5733_s25, 12  ;;  %p5738_p10 = scmp.ne.s32.totalorder %s5735_s13, 0 }
 0x3d2   : > { %s5737_s9 = smov %s5736_s19  ;;  %s5579_s11 = scalar_lea.hbm %s5736_s19, %s3160_s7 }
 0x3d3   : > { %p4276_p5 = pnand %p4275_p2, %p5738_p10  ;;  %p4282_p6 = scmp.lt.s32.totalorder %s4280_s2, %s4274_s27 }
 0x3d5   : > { %p4277_p9 = pneg %p4276_p5  ;;  %p4283_p7 = por %p4282_p6, %p4281_p12 }
 0x3d7   : > { %p4284_p13 = pnand %p4283_p7, %p4277_p9 }
 0x3d9   : > { %4287 = shalt.err (!%p4284_p13)
}
 0x3da   : > { %s4288_s6 = scalar_lea.hbm %s5579_s11, 4096  ;;  %s4292_s0 = scalar_lea.hbm %s5737_s9, 8192 }
 0x3db   : > { %p4289_p1 = scmp.ne.s32.totalorder %s5579_s11, %s4288_s6  ;;  %p4293_p0 = scmp.lt.u32.totalorder %s5579_s11, %s5737_s9 }
 0x3dc   : > { %p4294_p3 = scmp.lt.u32.totalorder %s4292_s0, %s4288_s6  ;;  %p4296_p2 = scmp.lt.u32.totalorder %s4288_s6, %s5579_s11 }
 0x3dd   : > { %p4290_p4 = pnand %p4289_p1, %p5738_p10 }
 0x3de   : > { %p4295_p11 = por %p4294_p3, %p4293_p0 }
 0x3df   : > { %p4291_p8 = pneg %p4290_p4 }
 0x3e0   : > { %p4297_p5 = por %p4296_p2, %p4295_p11 }
 0x3e2   : > { %p4298_p9 = pnand %p4297_p5, %p4291_p8 }
 0x3e4   : > { %4301 = shalt.err (!%p4298_p9)
}
 0x3e5   : > { %s4445_s25 = smov 128   ;;  %s4446_s5 = smov 8  }
 0x3e6   : > { %3602 = dma.vmem_to_hbm [thread:$0]  (%p5738_p10), %s5582_s16, 4096, %s5579_s11, %s5586_s21, %s4445_s25, %s4445_s25, %s4446_s5  }
 0x3e7 PF: > { %s5739_s7 = sld [smem:[#allocation17_spill]]  ;;  %s5740_s4 = sld [smem:[#allocation25_spill]] }
 0x3e8   : > { %p3627_p12 = scmp.ge.s32.totalorder %s4432_s28, 2 }
 0x3ed   : > { %s2822_s15 = sand.u32 1, %s5739_s7   ;;  %p5741_p6 = scmp.ne.s32.totalorder %s5740_s4, 0 }
 0x3ee   : > { %s2823_s19 = scalar_lea.sflag [#allocation5], %s2822_s15 }
 0x3ef   : > { %p3619_p7 = pnand %p3627_p12, %p5741_p6 }
 0x3f1   : > { %4375 = dma.done.wait (!%p3619_p7), %s2823_s19, 4096  }
 0x3f2   : > { %4377 = vsyncadd (!%p3619_p7), %s2823_s19, 4294963200  ;;  %s24_s28 = sadd.s32 1, %s4432_s28   ;;  %s5743_s15 = sld [smem:[#allocation18_spill]] }
 0x3f3   : > { %p5615_p13 = scmp.ge.s32.totalorder %s24_s28, 6   ;;  %s5744_s18 = sld [smem:[#allocation19_spill]] }
 0x3f4   : > { %s5745_s25 = sld [smem:[#allocation22_spill]]  ;;  %s5746_s13 = sld [smem:[#allocation26_spill]] }
 0x3f5   : > { %s5747_s11 = sld [smem:[#allocation27_spill]]  ;;  %s5749_s16 = smov %s4388_s17 }
 0x3f6   : > { %s5750_s17 = smov %s4676_s3  ;;  %s5751_s19 = smov %s4400_s20 }
 0x3f7   : > { %s5752_s20 = smov %s4669_s14  ;;  %s5753_s21 = smov %s4408_s22 }
 0x3f8   : > { %s5754_s22 = smov %s4412_s23  ;;  %s5755_s23 = smov %s4679_s10 }
 0x3f9   : > { %s5756_s24 = smov %s4424_s26  ;;  %23 = sbr.rel (!%p5615_p13) target bundleno = 18 (0x12), region = 110 }
 0x3fa   : > { %s5757_s26 = smov %s5746_s13 }
 0x3fb   : > { %s5758_s27 = smov %s5747_s11 }
 0x400   :  { %2828 = vsyncpa [#allocation4], 1 }
 0x401   :  { %2830 = vsyncpa [#allocation4 + $0x1], 1 }
 0x402   :  { %2831 = vsyncpa [#allocation7], 1 }
 0x403   :  { %2833 = vsyncpa [#allocation7 + $0x1], 1 }
 0x404   :  { %2834 = vsyncpa [#allocation10], 1 }
 0x405   :  { %2835 = vsyncpa [#allocation5], 1 }
 0x406   :  { %2837 = vsyncpa [#allocation5 + $0x1], 1 }

</bundles_post_ra>
